<compile_context>
chip_gen: v7x
topology: tpu7x:2x2x1
jax: 0.10.0
libtpu: 0.0.40
codegen_flags: <defaults>
</compile_context>

<pallas_src>
import jax
import jax.numpy as jnp
from jax import lax
from jax.experimental import pallas as pl
from jax.experimental.pallas import tpu as pltpu


def _basic_block_kernel(x_ref, w1_ref, w2_ref, ab1_ref, ab2_ref, o_ref, pad_ref):
    # x_ref   : (TB, H, W*C)    input tile, channels folded onto lanes (compute dtype)
    # w1_ref  : (3, W*C, W*C)   conv1 block-banded weights, one matrix per dy tap row
    # w2_ref  : (3, W*C, W*C)   conv2 block-banded weights
    # ab1_ref : (2, W*C)        folded BN1 [scale; bias], tiled over W (f32)
    # ab2_ref : (2, W*C)        folded BN2 [scale; bias]
    # o_ref   : (TB, H, W*C)    output tile (lane-dense)
    # pad_ref : (TB, H+2, W*C)  H-padded VMEM scratch, reused for both convs
    TB, H, WC = x_ref.shape

    x = x_ref[...]                                      # read x from HBM tile exactly once

    # Zero only the two H-halo rows, every step (2 lane-dense rows per image: negligible).
    # W-direction padding is folded into the banded weights, so there is no W halo.
    # Doing this per step (instead of once at program_id==0) stays correct when the
    # "parallel" grid axis is split across TensorCores.
    zrow = jnp.zeros((TB, 1, WC), pad_ref.dtype)
    pad_ref[:, 0:1, :] = zrow
    pad_ref[:, H + 1:H + 2, :] = zrow

    # In-kernel zero padding of the input (no padded HBM copy of x).
    pad_ref[:, 1:1 + H, :] = x

    def conv3x3(w_ref):
        # 3 MXU matmuls, one per dy: (TB*H, W*C) @ (W*C, W*C) with f32 accumulation.
        acc = None
        for dy in range(3):
            lhs = pad_ref[:, dy:dy + H, :].reshape(TB * H, WC)
            term = jnp.dot(lhs, w_ref[dy], preferred_element_type=jnp.float32)
            acc = term if acc is None else acc + term
        return acc                                      # (TB*H, W*C) f32

    # ---- conv1 -> BN1 (folded scale/bias) -> ReLU ----
    ab1 = ab1_ref[...]
    h = jnp.maximum(conv3x3(w1_ref) * ab1[0:1, :] + ab1[1:2, :], 0.0)

    # Reuse the same padded scratch for the conv1 activation (halo rows are still zero).
    pad_ref[:, 1:1 + H, :] = h.reshape(TB, H, WC).astype(pad_ref.dtype)

    # ---- conv2 -> BN2 -> + residual -> ReLU ----
    ab2 = ab2_ref[...]
    y = conv3x3(w2_ref) * ab2[0:1, :] + ab2[1:2, :]
    y = y + x.reshape(TB * H, WC).astype(jnp.float32)   # residual (f32 add)
    o_ref[...] = jnp.maximum(y, 0.0).reshape(TB, H, WC).astype(o_ref.dtype)


def _band_weights(w, width):
    """(Cout, Cin, 3, 3) OIHW conv weight -> (3, W*Cin, W*Cout) block-banded matrices.

    band[dy][wq*Cin + ci, w*Cout + co] = weight[co, ci, dy, wq - w + 1] for |wq - w| <= 1,
    else 0, so one output row of a 3x3/pad=1 conv is  sum_dy x_row(y+dy-1) @ band[dy]
    with the W-direction zero padding folded into the band (edge taps simply absent).
    """
    cin, cout = w.shape[1], w.shape[0]
    wt = jnp.transpose(w, (2, 3, 1, 0))                                   # (dy, dx, Cin, Cout)
    dx = jnp.arange(width)[:, None] - jnp.arange(width)[None, :] + 1      # (wq_in, w_out)
    mask = (dx >= 0) & (dx <= 2)
    taps = wt[:, jnp.clip(dx, 0, 2)]                                      # (3, W, W, Cin, Cout)
    band = jnp.where(mask[None, :, :, None, None], taps, 0.0)
    band = jnp.transpose(band, (0, 1, 3, 2, 4))                           # (3, wq, Cin, w, Cout)
    return band.reshape(3, width * cin, width * cout)


def _fold_bn(params, width, eps):
    """Eval-mode BN folded to per-channel scale/bias, tiled over W -> (2, W*C) f32."""
    gamma, beta, mean, var = (jnp.asarray(p, jnp.float32) for p in params)
    scale = gamma * lax.rsqrt(var + eps)
    bias = beta - mean * scale
    return jnp.stack([jnp.tile(scale, width), jnp.tile(bias, width)])


def _choose_block_b(B, per_batch_bytes, vmem_budget=24 << 20, min_steps=4):
    """Largest batch tile that divides B, fits the VMEM budget, and leaves >= min_steps
    grid steps so DMA/compute pipelining (and both TensorCores under megacore) overlap."""
    best = 1
    for tb in range(1, B + 1):
        if B % tb:
            continue
        if tb * per_batch_bytes > vmem_budget:
            break
        if B // tb >= min_steps:
            best = tb
    return best


def resnet_basic_block_nhwc(x_nhwc, w1, w2, bn1_params, bn2_params, *, eps=1e-5,
                            block_b=None, compute_dtype=jnp.bfloat16,
                            vmem_limit_bytes=None):
    """ResNetBasicBlock forward, NHWC activations (stride=1, eval-mode BN).

    x_nhwc : (B, H, W, C);  w1, w2 : (C, C, 3, 3) OIHW, no bias;
    bn*_params : (gamma, beta, running_mean, running_var), each (C,).
    """
    B, H, W, C = x_nhwc.shape
    if w1.shape != (C, C, 3, 3) or w2.shape != (C, C, 3, 3):
        raise ValueError("kernel supports 3x3 convs with in_channels == out_channels, stride=1")

    WC = W * C
    out_dtype = x_nhwc.dtype

    # Fold channels onto the lane axis (pure reshape, no data movement) + cast for the MXU.
    x2d = x_nhwc.reshape(B, H, WC).astype(compute_dtype)
    w1b = _band_weights(w1, W).astype(compute_dtype)
    w2b = _band_weights(w2, W).astype(compute_dtype)
    ab1 = _fold_bn(bn1_params, W, eps)
    ab2 = _fold_bn(bn2_params, W, eps)

    csize = jnp.dtype(compute_dtype).itemsize
    osize = jnp.dtype(out_dtype).itemsize
    # rough per-batch VMEM: double-buffered in/out tiles + padded scratch + f32 temporaries
    per_batch = H * WC * (2 * csize + 2 * osize + 12) + (H + 2) * WC * csize
    if block_b is None:
        block_b = _choose_block_b(B, per_batch)
    if B % block_b:
        raise ValueError("block_b must divide the batch size")
    nb = B // block_b

    if vmem_limit_bytes is None:
        weight_bytes = 2 * 2 * (3 * WC * WC) * csize        # both convs, double-buffered
        est = block_b * per_batch + weight_bytes + (8 << 20)
        vmem_limit_bytes = min(max(int(est), 32 << 20), 64 << 20)

    grid_spec = pltpu.PrefetchScalarGridSpec(
        num_scalar_prefetch=0,
        grid=(nb,),
        in_specs=[
            pl.BlockSpec((block_b, H, WC), lambda b: (b, 0, 0)),   # input tile, batch-tiled
            pl.BlockSpec((3, WC, WC), lambda b: (0, 0, 0)),        # conv1 bands (resident)
            pl.BlockSpec((3, WC, WC), lambda b: (0, 0, 0)),        # conv2 bands (resident)
            pl.BlockSpec((2, WC), lambda b: (0, 0)),               # BN1 scale/bias
            pl.BlockSpec((2, WC), lambda b: (0, 0)),               # BN2 scale/bias
        ],
        out_specs=pl.BlockSpec((block_b, H, WC), lambda b: (b, 0, 0)),  # lane-dense output
        scratch_shapes=[pltpu.VMEM((block_b, H + 2, WC), compute_dtype)],
    )

    out2d = pl.pallas_call(
        _basic_block_kernel,
        out_shape=jax.ShapeDtypeStruct((B, H, WC), out_dtype),
        grid_spec=grid_spec,
        compiler_params=pltpu.CompilerParams(
            dimension_semantics=("parallel",),           # batch tiles are independent
            vmem_limit_bytes=int(vmem_limit_bytes)),
    )(x2d, w1b, w2b, ab1, ab2)

    return out2d.reshape(B, H, W, C)


def resnet_basic_block(x, w1, w2, bn1_params, bn2_params, **kwargs):
    """NCHW wrapper matching the PyTorch module interface. The NCHW<->NHWC transposes are
    plain XLA ops outside the kernel; prefer `resnet_basic_block_nhwc` when the surrounding
    graph is already channels-last to avoid the extra HBM passes."""
    x_nhwc = jnp.transpose(x, (0, 2, 3, 1))
    out = resnet_basic_block_nhwc(x_nhwc, w1, w2, bn1_params, bn2_params, **kwargs)
    return jnp.transpose(out, (0, 3, 1, 2))


def resnet_basic_block_ref(x, w1, w2, bn1_params, bn2_params, eps=1e-5):
    """Pure-JAX reference of the PyTorch forward (stride=1, eval-mode BN)."""
    def bn(y, p):
        g, b, m, v = p
        inv = g / jnp.sqrt(v + eps)
        return y * inv[None, :, None, None] + (b - m * inv)[None, :, None, None]

    dn = ('NCHW', 'OIHW', 'NCHW')
    y = lax.conv_general_dilated(x, w1, (1, 1), 'SAME', dimension_numbers=dn)
    y = jnp.maximum(bn(y, bn1_params), 0.0)
    y = lax.conv_general_dilated(y, w2, (1, 1), 'SAME', dimension_numbers=dn)
    y = bn(y, bn2_params)
    return jnp.maximum(y + x, 0.0)


if __name__ == "__main__":
    # Small shapes consistent with the module; B=8 gives >=4 pipelined grid steps.
    B, C, H, W = 8, 16, 16, 16

    key = jax.random.PRNGKey(0)
    ks = jax.random.split(key, 11)
    x = jax.random.normal(ks[0], (B, C, H, W), dtype=jnp.float32)
    w1 = jax.random.normal(ks[1], (C, C, 3, 3), dtype=jnp.float32) * 0.1
    w2 = jax.random.normal(ks[2], (C, C, 3, 3), dtype=jnp.float32) * 0.1

    bn1 = (jax.random.uniform(ks[3], (C,), minval=0.5, maxval=1.5),
           jax.random.normal(ks[4], (C,)) * 0.1,
           jax.random.normal(ks[5], (C,)) * 0.1,
           jax.random.uniform(ks[6], (C,), minval=0.5, maxval=1.5))
    bn2 = (jax.random.uniform(ks[7], (C,), minval=0.5, maxval=1.5),
           jax.random.normal(ks[8], (C,)) * 0.1,
           jax.random.normal(ks[9], (C,)) * 0.1,
           jax.random.uniform(ks[10], (C,), minval=0.5, maxval=1.5))

    ref = resnet_basic_block_ref(x, w1, w2, bn1, bn2)

    # Exact-math path (f32 MXU inputs): verifies the banded-conv algorithm tightly.
    out_f32 = jax.block_until_ready(
        resnet_basic_block(x, w1, w2, bn1, bn2, compute_dtype=jnp.float32))
    assert out_f32.shape == ref.shape
    assert jnp.allclose(out_f32, ref, atol=1e-3, rtol=1e-3), "f32 path mismatch vs reference"

    # Default perf path (bf16 MXU inputs, f32 accumulation / elementwise math).
    out = jax.block_until_ready(resnet_basic_block(x, w1, w2, bn1, bn2))
    assert out.shape == ref.shape
    rel_err = float(jnp.max(jnp.abs(out.astype(jnp.float32) - ref)) /
                    (jnp.max(jnp.abs(ref)) + 1e-6))
    assert rel_err < 0.06, f"bf16 path error too large: {rel_err}"

    print("KERNEL_OK")
</pallas_src>

<mosaic_0001>
module attributes {stable_mosaic.version = 11 : i64} {
  func.func @_basic_block_kernel(%arg0: i32, %arg1: memref<2x16x256xf32, #tpu.memory_space<vmem>>, %arg2: memref<3x256x256xf32, #tpu.memory_space<vmem>>, %arg3: memref<3x256x256xf32, #tpu.memory_space<vmem>>, %arg4: memref<2x256xf32, #tpu.memory_space<vmem>>, %arg5: memref<2x256xf32, #tpu.memory_space<vmem>>, %arg6: memref<2x16x256xf32, #tpu.memory_space<vmem>>, %arg7: memref<2x18x256xf32, #tpu.memory_space<vmem>>) attributes {dimension_semantics = [#tpu.dimension_semantics<parallel>], iteration_bounds = array<i64: 4>, scalar_prefetch = 0 : i64, scratch_operands = 1 : i64, tpu.core_type = #tpu.core_type<tc>, window_params = [{transform_indices = @transform_0, window_bounds = array<i64: 2, 16, 256>}, {pipeline_mode = #tpu.pipeline_mode<synchronous>, transform_indices = @transform_1, window_bounds = array<i64: 3, 256, 256>}, {pipeline_mode = #tpu.pipeline_mode<synchronous>, transform_indices = @transform_2, window_bounds = array<i64: 3, 256, 256>}, {pipeline_mode = #tpu.pipeline_mode<synchronous>, transform_indices = @transform_3, window_bounds = array<i64: 2, 256>}, {pipeline_mode = #tpu.pipeline_mode<synchronous>, transform_indices = @transform_4, window_bounds = array<i64: 2, 256>}, {transform_indices = @transform_5, window_bounds = array<i64: 2, 16, 256>}]} {
    %c0 = arith.constant 0 : index
    %c0_0 = arith.constant 0 : index
    %c0_1 = arith.constant 0 : index
    %0 = vector.load %arg1[%c0, %c0_0, %c0_1] : memref<2x16x256xf32, #tpu.memory_space<vmem>>, vector<2x16x256xf32>
    %cst = arith.constant 0.000000e+00 : f32
    %1 = vector.broadcast %cst : f32 to vector<2x1x256xf32>
    %c0_2 = arith.constant 0 : index
    %c0_3 = arith.constant 0 : index
    %c0_4 = arith.constant 0 : index
    %2 = vector.load %arg7[%c0_2, %c0_3, %c0_4] : memref<2x18x256xf32, #tpu.memory_space<vmem>>, vector<2x1x256xf32>
    tpu.vector_store %arg7[%c0_2, %c0_3, %c0_4], %1 {strides = array<i32>} : memref<2x18x256xf32, #tpu.memory_space<vmem>>, vector<2x1x256xf32>,
    %c0_5 = arith.constant 0 : index
    %c17 = arith.constant 17 : index
    %c0_6 = arith.constant 0 : index
    %3 = vector.load %arg7[%c0_5, %c17, %c0_6] : memref<2x18x256xf32, #tpu.memory_space<vmem>>, vector<2x1x256xf32>
    tpu.vector_store %arg7[%c0_5, %c17, %c0_6], %1 {strides = array<i32>} : memref<2x18x256xf32, #tpu.memory_space<vmem>>, vector<2x1x256xf32>,
    %c0_7 = arith.constant 0 : index
    %c1 = arith.constant 1 : index
    %c0_8 = arith.constant 0 : index
    %4 = vector.load %arg7[%c0_7, %c1, %c0_8] : memref<2x18x256xf32, #tpu.memory_space<vmem>>, vector<2x16x256xf32>
    tpu.vector_store %arg7[%c0_7, %c1, %c0_8], %0 {strides = array<i32>} : memref<2x18x256xf32, #tpu.memory_space<vmem>>, vector<2x16x256xf32>,
    %c0_9 = arith.constant 0 : index
    %c0_10 = arith.constant 0 : index
    %5 = vector.load %arg4[%c0_9, %c0_10] : memref<2x256xf32, #tpu.memory_space<vmem>>, vector<2x256xf32>
    %c0_11 = arith.constant 0 : index
    %c0_12 = arith.constant 0 : index
    %c0_13 = arith.constant 0 : index
    %6 = vector.load %arg7[%c0_11, %c0_12, %c0_13] : memref<2x18x256xf32, #tpu.memory_space<vmem>>, vector<2x16x256xf32>
    %7 = vector.shape_cast %6 : vector<2x16x256xf32> to vector<32x256xf32>
    %c0_14 = arith.constant 0 : index
    %c0_15 = arith.constant 0 : index
    %c0_16 = arith.constant 0 : index
    %8 = vector.load %arg2[%c0_14, %c0_15, %c0_16] : memref<3x256x256xf32, #tpu.memory_space<vmem>>, vector<1x256x256xf32>
    %9 = vector.shape_cast %8 : vector<1x256x256xf32> to vector<256x256xf32>
    %cst_17 = arith.constant dense<0.000000e+00> : vector<32x256xf32>
    %10 = tpu.matmul %7, %9, %cst_17 {dimension_numbers = #tpu.dot_dimension_numbers<[1], [0], [0], [1], [0, 0, 1, 1], [], []>} : vector<32x256xf32>, vector<256x256xf32>, vector<32x256xf32> -> vector<32x256xf32>
    %c0_18 = arith.constant 0 : index
    %c1_19 = arith.constant 1 : index
    %c0_20 = arith.constant 0 : index
    %11 = vector.load %arg7[%c0_18, %c1_19, %c0_20] : memref<2x18x256xf32, #tpu.memory_space<vmem>>, vector<2x16x256xf32>
    %12 = vector.shape_cast %11 : vector<2x16x256xf32> to vector<32x256xf32>
    %c1_21 = arith.constant 1 : index
    %c0_22 = arith.constant 0 : index
    %c0_23 = arith.constant 0 : index
    %13 = vector.load %arg2[%c1_21, %c0_22, %c0_23] : memref<3x256x256xf32, #tpu.memory_space<vmem>>, vector<1x256x256xf32>
    %14 = vector.shape_cast %13 : vector<1x256x256xf32> to vector<256x256xf32>
    %cst_24 = arith.constant dense<0.000000e+00> : vector<32x256xf32>
    %15 = tpu.matmul %12, %14, %cst_24 {dimension_numbers = #tpu.dot_dimension_numbers<[1], [0], [0], [1], [0, 0, 1, 1], [], []>} : vector<32x256xf32>, vector<256x256xf32>, vector<32x256xf32> -> vector<32x256xf32>
    %16 = arith.addf %10, %15 : vector<32x256xf32>
    %c0_25 = arith.constant 0 : index
    %c2 = arith.constant 2 : index
    %c0_26 = arith.constant 0 : index
    %17 = vector.load %arg7[%c0_25, %c2, %c0_26] : memref<2x18x256xf32, #tpu.memory_space<vmem>>, vector<2x16x256xf32>
    %18 = vector.shape_cast %17 : vector<2x16x256xf32> to vector<32x256xf32>
    %c2_27 = arith.constant 2 : index
    %c0_28 = arith.constant 0 : index
    %c0_29 = arith.constant 0 : index
    %19 = vector.load %arg2[%c2_27, %c0_28, %c0_29] : memref<3x256x256xf32, #tpu.memory_space<vmem>>, vector<1x256x256xf32>
    %20 = vector.shape_cast %19 : vector<1x256x256xf32> to vector<256x256xf32>
    %cst_30 = arith.constant dense<0.000000e+00> : vector<32x256xf32>
    %21 = tpu.matmul %18, %20, %cst_30 {dimension_numbers = #tpu.dot_dimension_numbers<[1], [0], [0], [1], [0, 0, 1, 1], [], []>} : vector<32x256xf32>, vector<256x256xf32>, vector<32x256xf32> -> vector<32x256xf32>
    %22 = arith.addf %16, %21 : vector<32x256xf32>
    %23 = vector.extract_strided_slice %5 {offsets = [0, 0], sizes = [1, 256], strides = [1, 1]} : vector<2x256xf32> to vector<1x256xf32>
    %24 = vector.broadcast %23 : vector<1x256xf32> to vector<32x256xf32>
    %25 = arith.mulf %22, %24 : vector<32x256xf32>
    %26 = vector.extract_strided_slice %5 {offsets = [1, 0], sizes = [1, 256], strides = [1, 1]} : vector<2x256xf32> to vector<1x256xf32>
    %27 = vector.broadcast %26 : vector<1x256xf32> to vector<32x256xf32>
    %28 = arith.addf %25, %27 : vector<32x256xf32>
    %cst_31 = arith.constant 0.000000e+00 : f32
    %29 = vector.broadcast %cst_31 : f32 to vector<32x256xf32>
    %30 = arith.maximumf %28, %29 : vector<32x256xf32>
    %31 = vector.shape_cast %30 : vector<32x256xf32> to vector<2x16x256xf32>
    %c0_32 = arith.constant 0 : index
    %c1_33 = arith.constant 1 : index
    %c0_34 = arith.constant 0 : index
    %32 = vector.load %arg7[%c0_32, %c1_33, %c0_34] : memref<2x18x256xf32, #tpu.memory_space<vmem>>, vector<2x16x256xf32>
    tpu.vector_store %arg7[%c0_32, %c1_33, %c0_34], %31 {strides = array<i32>} : memref<2x18x256xf32, #tpu.memory_space<vmem>>, vector<2x16x256xf32>,
    %c0_35 = arith.constant 0 : index
    %c0_36 = arith.constant 0 : index
    %33 = vector.load %arg5[%c0_35, %c0_36] : memref<2x256xf32, #tpu.memory_space<vmem>>, vector<2x256xf32>
    %c0_37 = arith.constant 0 : index
    %c0_38 = arith.constant 0 : index
    %c0_39 = arith.constant 0 : index
    %34 = vector.load %arg7[%c0_37, %c0_38, %c0_39] : memref<2x18x256xf32, #tpu.memory_space<vmem>>, vector<2x16x256xf32>
    %35 = vector.shape_cast %34 : vector<2x16x256xf32> to vector<32x256xf32>
    %c0_40 = arith.constant 0 : index
    %c0_41 = arith.constant 0 : index
    %c0_42 = arith.constant 0 : index
    %36 = vector.load %arg3[%c0_40, %c0_41, %c0_42] : memref<3x256x256xf32, #tpu.memory_space<vmem>>, vector<1x256x256xf32>
    %37 = vector.shape_cast %36 : vector<1x256x256xf32> to vector<256x256xf32>
    %cst_43 = arith.constant dense<0.000000e+00> : vector<32x256xf32>
    %38 = tpu.matmul %35, %37, %cst_43 {dimension_numbers = #tpu.dot_dimension_numbers<[1], [0], [0], [1], [0, 0, 1, 1], [], []>} : vector<32x256xf32>, vector<256x256xf32>, vector<32x256xf32> -> vector<32x256xf32>
    %c0_44 = arith.constant 0 : index
    %c1_45 = arith.constant 1 : index
    %c0_46 = arith.constant 0 : index
    %39 = vector.load %arg7[%c0_44, %c1_45, %c0_46] : memref<2x18x256xf32, #tpu.memory_space<vmem>>, vector<2x16x256xf32>
    %40 = vector.shape_cast %39 : vector<2x16x256xf32> to vector<32x256xf32>
    %c1_47 = arith.constant 1 : index
    %c0_48 = arith.constant 0 : index
    %c0_49 = arith.constant 0 : index
    %41 = vector.load %arg3[%c1_47, %c0_48, %c0_49] : memref<3x256x256xf32, #tpu.memory_space<vmem>>, vector<1x256x256xf32>
    %42 = vector.shape_cast %41 : vector<1x256x256xf32> to vector<256x256xf32>
    %cst_50 = arith.constant dense<0.000000e+00> : vector<32x256xf32>
    %43 = tpu.matmul %40, %42, %cst_50 {dimension_numbers = #tpu.dot_dimension_numbers<[1], [0], [0], [1], [0, 0, 1, 1], [], []>} : vector<32x256xf32>, vector<256x256xf32>, vector<32x256xf32> -> vector<32x256xf32>
    %44 = arith.addf %38, %43 : vector<32x256xf32>
    %c0_51 = arith.constant 0 : index
    %c2_52 = arith.constant 2 : index
    %c0_53 = arith.constant 0 : index
    %45 = vector.load %arg7[%c0_51, %c2_52, %c0_53] : memref<2x18x256xf32, #tpu.memory_space<vmem>>, vector<2x16x256xf32>
    %46 = vector.shape_cast %45 : vector<2x16x256xf32> to vector<32x256xf32>
    %c2_54 = arith.constant 2 : index
    %c0_55 = arith.constant 0 : index
    %c0_56 = arith.constant 0 : index
    %47 = vector.load %arg3[%c2_54, %c0_55, %c0_56] : memref<3x256x256xf32, #tpu.memory_space<vmem>>, vector<1x256x256xf32>
    %48 = vector.shape_cast %47 : vector<1x256x256xf32> to vector<256x256xf32>
    %cst_57 = arith.constant dense<0.000000e+00> : vector<32x256xf32>
    %49 = tpu.matmul %46, %48, %cst_57 {dimension_numbers = #tpu.dot_dimension_numbers<[1], [0], [0], [1], [0, 0, 1, 1], [], []>} : vector<32x256xf32>, vector<256x256xf32>, vector<32x256xf32> -> vector<32x256xf32>
    %50 = arith.addf %44, %49 : vector<32x256xf32>
    %51 = vector.extract_strided_slice %33 {offsets = [0, 0], sizes = [1, 256], strides = [1, 1]} : vector<2x256xf32> to vector<1x256xf32>
    %52 = vector.broadcast %51 : vector<1x256xf32> to vector<32x256xf32>
    %53 = arith.mulf %50, %52 : vector<32x256xf32>
    %54 = vector.extract_strided_slice %33 {offsets = [1, 0], sizes = [1, 256], strides = [1, 1]} : vector<2x256xf32> to vector<1x256xf32>
    %55 = vector.broadcast %54 : vector<1x256xf32> to vector<32x256xf32>
    %56 = arith.addf %53, %55 : vector<32x256xf32>
    %57 = vector.shape_cast %0 : vector<2x16x256xf32> to vector<32x256xf32>
    %58 = arith.addf %56, %57 : vector<32x256xf32>
    %cst_58 = arith.constant 0.000000e+00 : f32
    %59 = vector.broadcast %cst_58 : f32 to vector<32x256xf32>
    %60 = arith.maximumf %58, %59 : vector<32x256xf32>
    %61 = vector.shape_cast %60 : vector<32x256xf32> to vector<2x16x256xf32>
    %c0_59 = arith.constant 0 : index
    %c0_60 = arith.constant 0 : index
    %c0_61 = arith.constant 0 : index
    %62 = vector.load %arg6[%c0_59, %c0_60, %c0_61] : memref<2x16x256xf32, #tpu.memory_space<vmem>>, vector<2x16x256xf32>
    tpu.vector_store %arg6[%c0_59, %c0_60, %c0_61], %61 {strides = array<i32>} : memref<2x16x256xf32, #tpu.memory_space<vmem>>, vector<2x16x256xf32>,
    return
  }
  func.func @transform_0(%arg0: i32) -> (i32, i32, i32) {
    %c0_i32 = arith.constant 0 : i32
    %c0_i32_0 = arith.constant 0 : i32
    %c0_i32_1 = arith.constant 0 : i32
    return %arg0, %c0_i32, %c0_i32_0 : i32, i32, i32
  }
  func.func @transform_1(%arg0: i32) -> (i32, i32, i32) {
    %c0_i32 = arith.constant 0 : i32
    %c0_i32_0 = arith.constant 0 : i32
    %c0_i32_1 = arith.constant 0 : i32
    %c0_i32_2 = arith.constant 0 : i32
    return %c0_i32, %c0_i32_0, %c0_i32_1 : i32, i32, i32
  }
  func.func @transform_2(%arg0: i32) -> (i32, i32, i32) {
    %c0_i32 = arith.constant 0 : i32
    %c0_i32_0 = arith.constant 0 : i32
    %c0_i32_1 = arith.constant 0 : i32
    %c0_i32_2 = arith.constant 0 : i32
    return %c0_i32, %c0_i32_0, %c0_i32_1 : i32, i32, i32
  }
  func.func @transform_3(%arg0: i32) -> (i32, i32) {
    %c0_i32 = arith.constant 0 : i32
    %c0_i32_0 = arith.constant 0 : i32
    %c0_i32_1 = arith.constant 0 : i32
    return %c0_i32, %c0_i32_0 : i32, i32
  }
  func.func @transform_4(%arg0: i32) -> (i32, i32) {
    %c0_i32 = arith.constant 0 : i32
    %c0_i32_0 = arith.constant 0 : i32
    %c0_i32_1 = arith.constant 0 : i32
    return %c0_i32, %c0_i32_0 : i32, i32
  }
  func.func @transform_5(%arg0: i32) -> (i32, i32, i32) {
    %c0_i32 = arith.constant 0 : i32
    %c0_i32_0 = arith.constant 0 : i32
    %c0_i32_1 = arith.constant 0 : i32
    return %arg0, %c0_i32, %c0_i32_0 : i32, i32, i32
  }
}

</mosaic_0001>

<bundles_post_ra>
// kernel: tpu_custom_call.1
= control target key start
LH: loop header
LB: loop body
LE: loop exit
PB: predicated region body
PF: predicated region fallthrough
CT: control target
= control target key end

     0   :  { %10 = vsyncpa [#allocation4], 0  ;;  %s2908_s0 = inlined_call_operand.hbm [shape: f32[8,16,256], index: 0, kind: input, shape index: {}]   ;;  %s2909_s1 = inlined_call_operand.hbm [shape: f32[3,256,256], index: 1, kind: input, shape index: {}]   ;;  %s2910_s2 = inlined_call_operand.hbm [shape: f32[3,256,256], index: 2, kind: input, shape index: {}]   ;;  %s2911_s3 = inlined_call_operand.vmem [shape: f32[2,256], index: 3, kind: input, shape index: {}]   ;;  %s2912_s4 = inlined_call_operand.vmem [shape: f32[2,256], index: 4, kind: input, shape index: {}]   ;;  %s2913_s5 = inlined_call_operand.hbm [shape: f32[8,16,256], index: 5, kind: output, shape index: {}]  }
   0x1   :  { %12 = vsyncpa [#allocation4 + $0x1], 0 }
   0x2   :  { %13 = vsyncpa [#allocation7], 0 }
   0x3   :  { %14 = vsyncpa [#allocation5], 0 }
   0x4   :  { %16 = vsyncpa [#allocation5 + $0x1], 0  ;;  %s2491_s18 = smov 0   ;;  %s2493_s19 = smov 0  }
   0x5   :  { %s2495_s20 = smov 0   ;;  %s2497_s21 = smov 0  }
   0x6 LB: > { %s2512_s22 = sadd.s32 4294967295, %s2450_s21   ;;  %s1774_s23 = sadd.s32 4294967294, %s2450_s21   ;;  %s2450_s21 = sphi %s2497_s21, %s2932_s21   ;;  %s2446_s20 = sphi %s2495_s20, %s2931_s20   ;;  %s2442_s19 = sphi %s2493_s19, %s2930_s19   ;;  %s2438_s18 = sphi %s2491_s18, %s2929_s18  }
   0x7   : > { %p42_p0 = scmp.ne.s32.totalorder %s2442_s19, %s2438_s18  ;;  %p2914_p1 = scmp.eq.s32.totalorder %s2512_s22, 0 }
   0x8   : > { %p156_p3 = scmp.eq.s32.totalorder %s1774_s23, 3  ;;  %p1775_p5 = scmp.ge.s32.totalorder %s2450_s21, 1 }
   0x9   : > { %p2521_p4 = por %p2914_p1, %p42_p0  ;;  %p163_p7 = scmp.lt.s32.totalorder %s2450_s21, 5 }
   0xa   : > { %p2526_p6 = por %p156_p3, %p42_p0  ;;  %s2452_s27 = smov [#allocation6]  }
   0xb   : > { %s2917_s24 = scalar_select %p2521_p4, 1, 0 }
   0xc   : > { %s2918_s25 = scalar_select %p2526_p6, 1, 0 }
   0xd   : > { %p2531_p8 = pnand %p1775_p5, %p163_p7  ;;  %s175_s28 = sshll.u32 %s2452_s27, 4  ;;  %s176_s28 = int_to_ptr.vmem [resolvable:$true] %s175_s28 }
   0xe   : > { %s2453_s30 = smov [#allocation8]   ;;  %s2294_s9 = scalar_lea.hbm %s2909_s1, 24576 }
   0xf   : > { %s2919_s26 = scalar_select %p2531_p8, 1, 0 }
  0x10   : > { %p2226_p9 = pneg %p2531_p8  ;;  %s188_s6 = sshll.u32 %s2453_s30, 4  ;;  %s2543_s6 = int_to_ptr.vmem [resolvable:$true] %s188_s6 }
  0x11   : > { %p2295_p11 = scmp.ne.s32.totalorder %s2909_s1, %s2294_s9  ;;  %p2301_p3 = scmp.lt.u32.totalorder %s2294_s9, %s2909_s1 }
  0x12   : > { %p2539_p10 = pnand %p2226_p9, %p2914_p1 }
  0x14   : > { %p2296_p12 = pneg %p2539_p10 }
  0x16   : > { %p2297_p13 = pnand %p2296_p12, %p2295_p11 }
  0x18   : > { %p2298_p0 = pneg %p2297_p13 }
  0x1a   : > { %p2303_p5 = pnand %p2301_p3, %p2298_p0 }
  0x1c   : > { %2306 = shalt.err (!%p2303_p5)
}
  0x1d   : > { %s2307_s14 = scalar_lea.vmem %s176_s28, 24576  ;;  %p2315_p2 = scmp.lt.s32.totalorder %s176_s28, %s176_s28 }
  0x1e   : > { %p2308_p7 = scmp.ne.s32.totalorder %s176_s28, %s2307_s14  ;;  %p2316_p6 = scmp.lt.s32.totalorder %s2307_s14, %s2307_s14 }
  0x20   : > { %p2310_p9 = pnand %p2308_p7, %p2296_p12  ;;  %p2317_p4 = por %p2316_p6, %p2315_p2 }
  0x22   : > { %p2311_p1 = pneg %p2310_p9 }
  0x24   : > { %p2318_p8 = pnand %p2317_p4, %p2311_p1 }
  0x26   : > { %2321 = shalt.err (!%p2318_p8)
}
  0x27   : > { %s2454_s15 = smov 256   ;;  %s2455_s16 = smov 16  }
  0x28   : > { %2229 = dma.hbm_to_vmem [thread:$0]  (!%p2539_p10), %s2909_s1, 24576, %s176_s28, [#allocation7], %s2454_s15, %s2454_s15, %s2455_s16  }
  0x29   : > { %s2322_s7 = scalar_lea.hbm %s2910_s2, 24576 }
  0x2a   : > { %p2323_p1 = scmp.ne.s32.totalorder %s2910_s2, %s2322_s7  ;;  %p2329_p6 = scmp.lt.u32.totalorder %s2322_s7, %s2910_s2 }
  0x2c   : > { %p2325_p2 = pnand %p2323_p1, %p2296_p12 }
  0x2e   : > { %p2326_p4 = pneg %p2325_p2 }
  0x30   : > { %p2331_p8 = pnand %p2329_p6, %p2326_p4 }
  0x32   : > { %2334 = shalt.err (!%p2331_p8)
}
  0x33   : > { %s2335_s28 = scalar_lea.vmem %s2543_s6, 24576  ;;  %p2343_p3 = scmp.lt.s32.totalorder %s2543_s6, %s2543_s6 }
  0x34   : > { %p2336_p11 = scmp.ne.s32.totalorder %s2543_s6, %s2335_s28  ;;  %p2344_p5 = scmp.lt.s32.totalorder %s2335_s28, %s2335_s28 }
  0x36   : > { %p2338_p13 = pnand %p2336_p11, %p2296_p12  ;;  %p2345_p7 = por %p2344_p5, %p2343_p3 }
  0x38   : > { %p2339_p0 = pneg %p2338_p13 }
  0x3a   : > { %p2346_p9 = pnand %p2345_p7, %p2339_p0 }
  0x3c   : > { %2349 = shalt.err (!%p2346_p9)
}
  0x3d   : > { %2232 = dma.hbm_to_vmem [thread:$0]  (!%p2539_p10), %s2910_s2, 24576, %s2543_s6, [#allocation7], %s2454_s15, %s2454_s15, %s2455_s16  }
  0x3e   : > { %s2599_s29 = sadd.s32 1, %s2450_s21   ;;  %s29_s14 = sadd.s32 1, %s2446_s20 }
  0x3f   : > { %s26_s17 = ssub.s32 %s2450_s21, %s2599_s29  ;;  %p36_p12 = scmp.ne.s32.totalorder %s2446_s20, %s2442_s19 }
  0x40   : > { %p27_p1 = scmp.eq.s32.totalorder %s26_s17, 0  ;;  %p37_p2 = scmp.eq.s32.totalorder %s2450_s21, 0 }
  0x41   : > { %p2921_p4 = scmp.eq.s32.totalorder %s2512_s22, 3  ;;  %p2243_p8 = scmp.lt.s32.totalorder %s2450_s21, 4 }
  0x42   : > { %s2615_s27 = scalar_select %p27_p1, %s2446_s20, %s29_s14  }
  0x43   : > { %p2609_p6 = por %p2921_p4, %p36_p12  ;;  %p38_p11 = por %p37_p2, %p36_p12 }
  0x44   : > { %s208_s30 = sand.u32 1, %s2446_s20   ;;  %s1795_s6 = sshll.u32 %s2450_s21, 10 }
  0x45   : > { %s1779_s7 = sshll.u32 %s208_s30, 6  ;;  %s2622_s10 = scalar_lea.hbm %s2908_s0, %s1795_s6 }
  0x46   : > { %s212_s11 = scalar_lea.vmem [#allocation3], %s1779_s7  ;;  %p2626_p10 = pnand %p2243_p8, %p38_p11 }
  0x47   : > { %s220_s28 = sshll.u32 %s212_s11, 4  ;;  %s2630_s13 = scalar_lea.sflag [#allocation4], %s208_s30  ;;  %s2624_s28 = int_to_ptr.vmem [resolvable:$true] %s220_s28 }
  0x48   : > { %s2350_s14 = scalar_lea.hbm %s2622_s10, 1024  ;;  %p2352_p0 = pneg %p2626_p10 }
  0x49   : > { %p2351_p13 = scmp.ne.s32.totalorder %s2622_s10, %s2350_s14  ;;  %s2355_s6 = scalar_lea.hbm %s2908_s0, 4096 }
  0x4a   : > { %p2356_p7 = scmp.lt.u32.totalorder %s2622_s10, %s2908_s0  ;;  %p2357_p9 = scmp.lt.u32.totalorder %s2355_s6, %s2350_s14 }
  0x4b   : > { %p2353_p3 = pnand %p2352_p0, %p2351_p13  ;;  %p2359_p1 = scmp.lt.u32.totalorder %s2350_s14, %s2622_s10 }
  0x4c   : > { %p2358_p12 = por %p2357_p9, %p2356_p7 }
  0x4d   : > { %p2354_p5 = pneg %p2353_p3 }
  0x4e   : > { %p2360_p2 = por %p2359_p1, %p2358_p12 }
  0x50   : > { %p2361_p4 = pnand %p2360_p2, %p2354_p5 }
  0x52   : > { %2364 = shalt.err (!%p2361_p4)
}
  0x53   : > { %s2365_s30 = scalar_lea.vmem %s2624_s28, 1024  ;;  %s2456_s11 = smov [#allocation3]  }
  0x54   : > { %p2366_p8 = scmp.ne.s32.totalorder %s2624_s28, %s2365_s30  ;;  %s2370_s17 = sshll.u32 %s2456_s11, 4  ;;  %s2371_s17 = int_to_ptr.vmem [resolvable:$false] %s2370_s17 }
  0x55   : > { %s2372_s7 = scalar_lea.vmem %s2371_s17, 2048  ;;  %p2373_p3 = scmp.lt.s32.totalorder %s2624_s28, %s2371_s17 }
  0x56   : > { %p2368_p11 = pnand %p2366_p8, %p2352_p0  ;;  %p2374_p7 = scmp.lt.s32.totalorder %s2372_s7, %s2365_s30 }
  0x58   : > { %p2369_p13 = pneg %p2368_p11  ;;  %p2375_p9 = por %p2374_p7, %p2373_p3 }
  0x5a   : > { %p2376_p12 = pnand %p2375_p9, %p2369_p13 }
  0x5c   : > { %2379 = shalt.err (!%p2376_p12)
}
  0x5d   : > { %2236 = dma.hbm_to_vmem [thread:$0]  (!%p2626_p10), %s2622_s10, 1024, %s2624_s28, %s2630_s13, %s2454_s15, %s2454_s15, %s2455_s16  }
  0x5e   : > { %p2924_p0 = scmp.ne.s32.totalorder %s2919_s26, 0 }
  0x5f   : > { %s2664_s14 = sand.u32 (!%p2924_p0), 1, %s2442_s19   ;;  %p2925_p5 = scmp.ne.s32.totalorder (!%p2924_p0), %s2917_s24, 0 }
  0x60   : > { %232 = sbr.rel (%p2924_p0) target bundleno = 911 (0x38f), region = 40  ;;  %s1784_s6 = sshll.u32 (!%p2924_p0), %s2664_s14, 6 }
  0x61   : > { %s235_s8 = scalar_lea.sflag (!%p2924_p0), [#allocation4], %s2664_s14  ;;  %s2670_s12 = scalar_lea.vmem (!%p2924_p0), [#allocation3], %s1784_s6 }
  0x67   : > { %2425 = dma.done.wait (%p2925_p5), %s235_s8, 1024  }
  0x68   : > { %2427 = vsyncadd (%p2925_p5), %s235_s8, 4294966272  ;;  %p2926_p10 = scmp.eq.s32.totalorder %s2512_s22, 0 }
  0x6a   : > { %2429 = dma.done.wait (%p2926_p10), [#allocation7], 49152   ;;  %p2927_p1 = pmov %p2926_p10 }
  0x6b   : > { %v283_v0 = vlaneseq  ;;  %v2457_v1 = vmov 0.0   ;;  %v467_v2 = vld [vmem:[#allocation6 + $0x208] sm:$0xff]  ;;  %v469_v3 = vld [vmem:[#allocation6 + $0x218] sm:$0xff]  ;;  %v466_v4 = vld [vmem:[#allocation6 + $0x200] sm:$0xff]  ;;  %vm306_vm1 = vcmask 1040384   ;;  %vm436_vm2 = vcmask 1046528  }
  0x6c   : > { %2431 = vsyncadd (%p2927_p1), [#allocation7], 4294918144  ;;  %v1798_v5 = vpack.c.bf16 %v469_v3, %v467_v2  ;;  %v468_v6 = vld [vmem:[#allocation6 + $0x210] sm:$0xff]  ;;  %v471_v7 = vld [vmem:[#allocation6 + $0x228] sm:$0xff]  ;;  %vm724_vm3 = vcmask 1045504   ;;  %s2842_s10 = scalar_lea.vmem [#allocation9], %s1784_s6 }
  0x6d   : > { %vm285_vm0 = vcmp.lt.s32.totalorder %v283_v0, 256  ;;  %v473_v8 = vld [vmem:[#allocation6 + $0x238] sm:$0xff]  ;;  %v1800_v9 = vpack.c.bf16 %v468_v6, %v466_v4  ;;  %v470_v11 = vld [vmem:[#allocation6 + $0x220] sm:$0xff]  ;;  %v472_v12 = vld [vmem:[#allocation6 + $0x230] sm:$0xff]  ;;  %s1797_s28 = sshll.u32 %s2512_s22, 10  ;;  %s1682_s13 = sshll.u32 %s2842_s10, 4  ;;  %s2863_s13 = int_to_ptr.vmem [resolvable:$true] %s1682_s13 }
  0x6e   : > { %287 = vst.msk [vmem:[#allocation2] ss:$8 sm:$0x3] %vm285_vm0, %v2457_v1  ;;  %290 = vst.msk [vmem:[#allocation2 + $0x30] ss:$8 sm:$0x3] %vm285_vm0, %v2457_v1  ;;  %v1802_v10 = vpack.c.bf16 %v473_v8, %v471_v7  ;;  %1799 = vmatprep.subr.bf16.mxu0 %v1798_v5  ;;  %v1804_v15 = vpack.c.bf16 %v472_v12, %v470_v11  ;;  %s2861_s11 = scalar_lea.hbm %s2913_s5, %s1797_s28 }
  0x6f   : > { %293 = vst.msk [vmem:[#allocation2 + $0x21] ss:$8 sm:$0x3] %vm285_vm0, %v2457_v1  ;;  %296 = vst.msk [vmem:[#allocation2 + $0x51] ss:$8 sm:$0x3] %vm285_vm0, %v2457_v1  ;;  %1801 = vmatpush1.bf16.msra.mxu0 %v1800_v9 }
  0x70   : > { %v475_v13 = vld [vmem:[#allocation6 + $0x248] sm:$0xff]  ;;  %v477_v14 = vld [vmem:[#allocation6 + $0x258] sm:$0xff]  ;;  %1803 = vmatprep.subr.bf16.mxu0 %v1802_v10  ;;  %v474_v17 = vld [vmem:[#allocation6 + $0x240] sm:$0xff]  ;;  %s1668_s22 = scalar_lea.sflag [#allocation5], %s2664_s14  ;;  %s2380_s17 = scalar_lea.vmem %s2863_s13, 1024 }
  0x71   : > { %v1806_v16 = vpack.c.bf16 %v477_v14, %v475_v13  ;;  %v476_v18 = vld [vmem:[#allocation6 + $0x250] sm:$0xff]  ;;  %v479_v19 = vld [vmem:[#allocation6 + $0x268] sm:$0xff]  ;;  %v481_v20 = vld [vmem:[#allocation6 + $0x278] sm:$0xff]  ;;  %p2381_p2 = scmp.ne.s32.totalorder %s2863_s13, %s2380_s17  ;;  %s2458_s7 = smov [#allocation9]  }
  0x72   : > { %v1808_v21 = vpack.c.bf16 %v476_v18, %v474_v17  ;;  %v1810_v22 = vpack.c.bf16 %v481_v20, %v479_v19  ;;  %v478_v23 = vld [vmem:[#allocation6 + $0x260] sm:$0xff]  ;;  %v480_v24 = vld [vmem:[#allocation6 + $0x270] sm:$0xff]  ;;  %v483_v25 = vld [vmem:[#allocation6 + $0x288] sm:$0xff]  ;;  %s2384_s6 = sshll.u32 %s2458_s7, 4  ;;  %s2385_s6 = int_to_ptr.vmem [resolvable:$false] %s2384_s6 }
  0x73   : > { %1805 = vmatpush1.bf16.msra.mxu0 %v1804_v15  ;;  %v485_v26 = vld [vmem:[#allocation6 + $0x298] sm:$0xff]  ;;  %v1812_v27 = vpack.c.bf16 %v480_v24, %v478_v23  ;;  %v482_v29 = vld [vmem:[#allocation6 + $0x280] sm:$0xff]  ;;  %v484_v30 = vld [vmem:[#allocation6 + $0x290] sm:$0xff]  ;;  %p2382_p4 = pnand %p2381_p2, %p2609_p6  ;;  %s2386_s8 = scalar_lea.vmem %s2385_s6, 2048 }
  0x74   : > { %1807 = vmatprep.subr.bf16.mxu0 %v1806_v16  ;;  %v1814_v28 = vpack.c.bf16 %v485_v26, %v483_v25  ;;  %v487_v31 = vld [vmem:[#allocation6 + $0x2a8] sm:$0xff]  ;;  %v489_v32 = vld [vmem:[#allocation6 + $0x2b8] sm:$0xff]  ;;  %v1816_v33 = vpack.c.bf16 %v484_v30, %v482_v29  ;;  %v486_v35 = vld [vmem:[#allocation6 + $0x2a0] sm:$0xff]  ;;  %p2387_p11 = scmp.lt.s32.totalorder %s2863_s13, %s2385_s6  ;;  %p2388_p13 = scmp.lt.s32.totalorder %s2386_s8, %s2380_s17 }
  0x75   : > { %v1818_v34 = vpack.c.bf16 %v489_v32, %v487_v31  ;;  %v488_v36 = vld [vmem:[#allocation6 + $0x2b0] sm:$0xff]  ;;  %v491_v37 = vld [vmem:[#allocation6 + $0x2c8] sm:$0xff]  ;;  %v493_v38 = vld [vmem:[#allocation6 + $0x2d8] sm:$0xff]  ;;  %p2383_p8 = pneg %p2382_p4 }
  0x76   : > { %v1820_v39 = vpack.c.bf16 %v488_v36, %v486_v35  ;;  %v490_v40 = vld [vmem:[#allocation6 + $0x2c0] sm:$0xff]  ;;  %v1822_v41 = vpack.c.bf16 %v493_v38, %v491_v37  ;;  %v492_v42 = vld [vmem:[#allocation6 + $0x2d0] sm:$0xff]  ;;  %v276_v43 = vld [vmem:[%s2670_s12 + $0x8] sm:$0xff]  ;;  %p2389_p3 = por %p2388_p13, %p2387_p11 }
  0x77   : > { %1809 = vmatpush1.bf16.msra.mxu0 %v1808_v21  ;;  %v278_v44 = vld [vmem:[%s2670_s12 + $0x18] sm:$0xff]  ;;  %v495_v45 = vld [vmem:[#allocation6 + $0x2e8] sm:$0xff]  ;;  %v308_v47 = vrot.slane %v276_v43, 7  ;;  %v2684_v49 = vld [vmem:[%s2670_s12] sm:$0xff]  ;;  %v1824_v52 = vpack.c.bf16 %v492_v42, %v490_v40 }
  0x78   : > { %1811 = vmatprep.subr.bf16.mxu0 %v1810_v22  ;;  %v497_v46 = vld [vmem:[#allocation6 + $0x2f8] sm:$0xff]  ;;  %v311_v48 = vrot.slane %v278_v44, 7  ;;  %v2687_v50 = vld [vmem:[%s2670_s12 + $0x10] sm:$0xff]  ;;  %v307_v51 = vrot.slane %v2684_v49, 7  ;;  %v494_v55 = vld [vmem:[#allocation6 + $0x2e0] sm:$0xff]  ;;  %p2390_p7 = pnand %p2389_p3, %p2383_p8 }
  0x79   : > { %332 = vst [vmem:[#allocation2 + $0x8] sm:$0xfe] %v308_v47  ;;  %v309_v53 = vrot.slane %v2687_v50, 7  ;;  %v1826_v54 = vpack.c.bf16 %v497_v46, %v495_v45  ;;  %v496_v56 = vld [vmem:[#allocation6 + $0x2f0] sm:$0xff]  ;;  %v499_v57 = vld [vmem:[#allocation6 + $0x308] sm:$0xff]  ;;  %v501_v58 = vld [vmem:[#allocation6 + $0x318] sm:$0xff] }
  0x7a   : > { %336 = vst [vmem:[#allocation2 + $0x28] sm:$0x1] %v311_v48  ;;  %331 = vst [vmem:[#allocation2] sm:$0xfe] %v307_v51  ;;  %v2696_v59 = vsel %vm306_vm1, %v308_v47, %v311_v48  ;;  %v1828_v60 = vpack.c.bf16 %v496_v56, %v494_v55  ;;  %v1830_v61 = vpack.c.bf16 %v501_v58, %v499_v57  ;;  %v498_v62 = vld [vmem:[#allocation6 + $0x300] sm:$0xff]  ;;  %v500_v63 = vld [vmem:[#allocation6 + $0x310] sm:$0xff] }
  0x7b   : > { %1813 = vmatpush1.bf16.msra.mxu0 %v1812_v27  ;;  %335 = vst [vmem:[#allocation2 + $0x20] sm:$0x1] %v309_v53  ;;  %v503_v1 = vld [vmem:[#allocation6 + $0x328] sm:$0xff]  ;;  %v505_v2 = vld [vmem:[#allocation6 + $0x338] sm:$0xff]  ;;  %v441_v3 = vrot.slane %v2696_v59, 1  ;;  %v1832_v5 = vpack.c.bf16 %v500_v63, %v498_v62  ;;  %v502_v8 = vld [vmem:[#allocation6 + $0x320] sm:$0xff] }
  0x7c   : > { %1815 = vmatprep.subr.bf16.mxu0 %v1814_v28  ;;  %v1834_v7 = vpack.c.bf16 %v505_v2, %v503_v1  ;;  %v504_v9 = vld [vmem:[#allocation6 + $0x330] sm:$0xff]  ;;  %v507_v10 = vld [vmem:[#allocation6 + $0x348] sm:$0xff]  ;;  %v509_v11 = vld [vmem:[#allocation6 + $0x358] sm:$0xff] }
  0x7d   : > { %v1836_v13 = vpack.c.bf16 %v504_v9, %v502_v8  ;;  %v1838_v14 = vpack.c.bf16 %v509_v11, %v507_v10  ;;  %v506_v15 = vld [vmem:[#allocation6 + $0x340] sm:$0xff]  ;;  %v508_v16 = vld [vmem:[#allocation6 + $0x350] sm:$0xff]  ;;  %v511_v17 = vld [vmem:[#allocation6 + $0x368] sm:$0xff] }
  0x7e   : > { %v513_v18 = vld [vmem:[#allocation6 + $0x378] sm:$0xff]  ;;  %v1840_v19 = vpack.c.bf16 %v508_v16, %v506_v15  ;;  %v510_v21 = vld [vmem:[#allocation6 + $0x360] sm:$0xff]  ;;  %v512_v22 = vld [vmem:[#allocation6 + $0x370] sm:$0xff] }
  0x7f   : > { %1817 = vmatpush1.bf16.msra.mxu0 %v1816_v33  ;;  %v1842_v20 = vpack.c.bf16 %v513_v18, %v511_v17  ;;  %v515_v23 = vld [vmem:[#allocation6 + $0x388] sm:$0xff]  ;;  %v517_v24 = vld [vmem:[#allocation6 + $0x398] sm:$0xff]  ;;  %v1844_v28 = vpack.c.bf16 %v512_v22, %v510_v21  ;;  %v2705_v30 = vld [vmem:[%s2670_s12 + $0x20] sm:$0xff] }
  0x80   : > { %1819 = vmatprep.subr.bf16.mxu0 %v1818_v34  ;;  %v417_v4 = vld [vmem:[#allocation2 + $0x8] sm:$0xfe]  ;;  %v282_v26 = vld [vmem:[%s2670_s12 + $0x38] sm:$0xff]  ;;  %v2708_v31 = vld [vmem:[%s2670_s12 + $0x30] sm:$0xff]  ;;  %v1846_v32 = vpack.c.bf16 %v517_v24, %v515_v23  ;;  %v313_v35 = vrot.slane %v2705_v30, 7 }
  0x81   : > { %v440_v6 = vrot.slane %v417_v4, 1  ;;  %v280_v25 = vld [vmem:[%s2670_s12 + $0x28] sm:$0xff]  ;;  %v317_v29 = vrot.slane %v282_v26, 7  ;;  %v514_v33 = vld [vmem:[#allocation6 + $0x380] sm:$0xff]  ;;  %v516_v34 = vld [vmem:[#allocation6 + $0x390] sm:$0xff]  ;;  %v315_v36 = vrot.slane %v2708_v31, 7 }
  0x82   : > { %v314_v27 = vrot.slane %v280_v25, 7  ;;  %v519_v37 = vld [vmem:[#allocation6 + $0x3a8] sm:$0xff]  ;;  %v521_v38 = vld [vmem:[#allocation6 + $0x3b8] sm:$0xff]  ;;  %337 = vst [vmem:[#allocation2 + $0x30] sm:$0xfe] %v313_v35  ;;  %v520_v42 = vld [vmem:[#allocation6 + $0x3b0] sm:$0xff] }
  0x83   : > { %1821 = vmatpush1.bf16.msra.mxu0 %v1820_v39  ;;  %v442_v12 = vsel %vm436_vm2, %v440_v6, %v441_v3  ;;  %342 = vst [vmem:[#allocation2 + $0x58] sm:$0x1] %v317_v29  ;;  %341 = vst [vmem:[#allocation2 + $0x50] sm:$0x1] %v315_v36  ;;  %v1848_v39 = vpack.c.bf16 %v516_v34, %v514_v33  ;;  %v1850_v40 = vpack.c.bf16 %v521_v38, %v519_v37  ;;  %v523_v43 = vld [vmem:[#allocation6 + $0x3c8] sm:$0xff]  ;;  %v525_v44 = vld [vmem:[#allocation6 + $0x3d8] sm:$0xff] }
  0x84   : > { %1823 = vmatprep.subr.bf16.mxu0 %v1822_v41  ;;  %594 = vmatprep.mubr.f32.mxu0 %v442_v12  ;;  %338 = vst [vmem:[#allocation2 + $0x38] sm:$0xfe] %v314_v27  ;;  %v518_v41 = vld [vmem:[#allocation6 + $0x3a0] sm:$0xff]  ;;  %v1854_v46 = vpack.c.bf16 %v525_v44, %v523_v43  ;;  %v524_v48 = vld [vmem:[#allocation6 + $0x3d0] sm:$0xff]  ;;  %v353_v62 = vld [vmem:[#allocation6 + $0x8] sm:$0xff] }
  0x85   : > { %v1852_v45 = vpack.c.bf16 %v520_v42, %v518_v41  ;;  %v522_v47 = vld [vmem:[#allocation6 + $0x3c0] sm:$0xff]  ;;  %v528_v58 = vld [vmem:[#allocation6 + $0x3f0] sm:$0xff]  ;;  %v355_v63 = vld [vmem:[#allocation6 + $0x18] sm:$0xff] }
  0x86   : > { %v1856_v55 = vpack.c.bf16 %v524_v48, %v522_v47  ;;  %v526_v57 = vld [vmem:[#allocation6 + $0x3e0] sm:$0xff]  ;;  %v419_v1 = vld [vmem:[#allocation2 + $0x28] sm:$0x1]  ;;  %v1862_v8 = vpack.c.bf16 %v355_v63, %v353_v62  ;;  %v359_v50 = vld [vmem:[#allocation6 + $0x38] sm:$0xff] }
  0x87   : > { %1825 = vmatpush1.bf16.msra.mxu0 %v1824_v52  ;;  %v527_v52 = vld [vmem:[#allocation6 + $0x3e8] sm:$0xff]  ;;  %v1860_v2 = vpack.c.bf16 %v528_v58, %v526_v57  ;;  %v352_v6 = vld [vmem:[#allocation6] sm:$0xff]  ;;  %v445_v10 = vrot.slane %v419_v1, 1  ;;  %v358_v16 = vld [vmem:[#allocation6 + $0x30] sm:$0xff] }
  0x88   : > { %1827 = vmatprep.subr.bf16.mxu0 %v1826_v54  ;;  %v529_v54 = vld [vmem:[#allocation6 + $0x3f8] sm:$0xff]  ;;  %v357_v9 = vld [vmem:[#allocation6 + $0x28] sm:$0xff]  ;;  %v418_v49 = vld [vmem:[#allocation2 + $0x20] sm:$0x1] }
  0x89   : > { %v1858_v56 = vpack.c.bf16 %v529_v54, %v527_v52  ;;  %v356_v15 = vld [vmem:[#allocation6 + $0x20] sm:$0xff]  ;;  %v446_v17 = vsel %vm436_vm2, %v441_v3, %v445_v10  ;;  %v420_v21 = vld [vmem:[#allocation2 + $0x30] sm:$0xfe]  ;;  %v361_v22 = vld [vmem:[#allocation6 + $0x48] sm:$0xff] }
  0x8a   : > { %v363_v23 = vld [vmem:[#allocation6 + $0x58] sm:$0xff]  ;;  %v1868_v25 = vpack.c.bf16 %v358_v16, %v356_v15  ;;  %v362_v30 = vld [vmem:[#allocation6 + $0x50] sm:$0xff]  ;;  %v365_v34 = vld [vmem:[#allocation6 + $0x68] sm:$0xff] }
  0x8b   : > { %1829 = vmatpush1.bf16.msra.mxu0 %v1828_v60  ;;  %v2717_v60 = vsel %vm306_vm1, %v307_v51, %v309_v53  ;;  %v2721_v51 = vsel %vm306_vm1, %v314_v27, %v317_v29  ;;  %v421_v53 = vld [vmem:[#allocation2 + $0x38] sm:$0xfe]  ;;  %v423_v24 = vld [vmem:[#allocation2 + $0x58] sm:$0x1]  ;;  %v447_v27 = vrot.slane %v420_v21, 1  ;;  %v1870_v3 = vpack.c.bf16 %v363_v23, %v361_v22  ;;  %v360_v29 = vld [vmem:[#allocation6 + $0x40] sm:$0xff] }
  0x8c   : > { %1831 = vmatprep.subr.bf16.mxu0 %v1830_v61  ;;  %v416_v61 = vld [vmem:[#allocation2] sm:$0xfe]  ;;  %v450_v18 = vrot.slane %v421_v53, 1  ;;  %v422_v33 = vld [vmem:[#allocation2 + $0x50] sm:$0x1]  ;;  %v369_v43 = vld [vmem:[#allocation6 + $0x88] sm:$0xff] }
  0x8d   : > { %v437_v4 = vrot.slane %v416_v61, 1  ;;  %v453_v38 = vrot.slane %v422_v33, 1  ;;  %v366_v41 = vld [vmem:[#allocation6 + $0x70] sm:$0xff]  ;;  %v371_v44 = vld [vmem:[#allocation6 + $0x98] sm:$0xff]  ;;  %v368_v48 = vld [vmem:[#allocation6 + $0x80] sm:$0xff] }
  0x8e   : > { %v1878_v47 = vpack.c.bf16 %v371_v44, %v369_v43  ;;  %v370_v52 = vld [vmem:[#allocation6 + $0x90] sm:$0xff]  ;;  %v345_v54 = vld [vmem:[#allocation2 + $0x8] sm:$0xff]  ;;  %v372_v57 = vld [vmem:[#allocation6 + $0xa0] sm:$0xff] }
  0x8f   : > { %1833 = vmatpush1.bf16.msra.mxu0 %v1832_v5  ;;  %v438_v5 = vrot.slane %v2717_v60, 1  ;;  %v374_v58 = vld [vmem:[#allocation6 + $0xb0] sm:$0xff]  ;;  %v1143_v61 = vld [vmem:[#allocation8 + $0x208] sm:$0xff]  ;;  %v1145_v62 = vld [vmem:[#allocation8 + $0x218] sm:$0xff]  ;;  %v1880_v1 = vpack.c.bf16 %v370_v52, %v368_v48 }
  0x90   : > { %1835 = vmatprep.subr.bf16.mxu0 %v1834_v7  ;;  %v354_v7 = vld [vmem:[#allocation6 + $0x10] sm:$0xff]  ;;  %v1142_v63 = vld [vmem:[#allocation8 + $0x200] sm:$0xff]  ;;  %v377_v53 = vld [vmem:[#allocation6 + $0xc8] sm:$0xff] }
  0x91   : > { %v439_v11 = vsel %vm436_vm2, %v437_v4, %v438_v5  ;;  %v1864_v12 = vpack.c.bf16 %v354_v7, %v352_v6  ;;  %v1144_v4 = vld [vmem:[#allocation8 + $0x210] sm:$0xff]  ;;  %v1149_v6 = vld [vmem:[#allocation8 + $0x238] sm:$0xff]  ;;  %v376_v15 = vld [vmem:[#allocation6 + $0xc0] sm:$0xff] }
  0x92   : > { %v1148_v10 = vld [vmem:[#allocation8 + $0x230] sm:$0xff]  ;;  %v1155_v22 = vld [vmem:[#allocation8 + $0x268] sm:$0xff]  ;;  %v1157_v23 = vld [vmem:[#allocation8 + $0x278] sm:$0xff] }
  0x93   : > { %1837 = vmatpush1.bf16.msra.mxu0 %v1836_v13  ;;  %v1866_v13 = vpack.c.bf16 %v359_v50, %v357_v9  ;;  %v1146_v50 = vld [vmem:[#allocation8 + $0x220] sm:$0xff]  ;;  %v378_v21 = vld [vmem:[#allocation6 + $0xd0] sm:$0xff]  ;;  %v1159_v33 = vld [vmem:[#allocation8 + $0x288] sm:$0xff] }
  0x94   : > { %1839 = vmatprep.subr.bf16.mxu0 %v1838_v14  ;;  %v443_v14 = vrot.slane %v418_v49, 1  ;;  %v1151_v49 = vld [vmem:[#allocation8 + $0x248] sm:$0xff]  ;;  %v386_v44 = vld [vmem:[#allocation6 + $0x110] sm:$0xff]  ;;  %v391_v48 = vld [vmem:[#allocation6 + $0x138] sm:$0xff] }
  0x96   : > { %v444_v26 = vsel %vm436_vm2, %v438_v5, %v443_v14  ;;  %v1147_v5 = vld [vmem:[#allocation8 + $0x228] sm:$0xff]  ;;  %v1884_v14 = vpack.c.bf16 %v374_v58, %v372_v57  ;;  %v1162_v57 = vld [vmem:[#allocation8 + $0x2a0] sm:$0xff]  ;;  %v1164_v58 = vld [vmem:[#allocation8 + $0x2b0] sm:$0xff] }
  0x97   : > { %1841 = vmatpush1.bf16.msra.mxu0 %v1840_v19  ;;  %v451_v19 = vrot.slane %v2721_v51, 1  ;;  %v1994_v9 = vpack.c.bf16 %v1149_v6, %v1147_v5  ;;  %v2012_v5 = vpack.c.bf16 %v1164_v58, %v1162_v57  ;;  %v413_v57 = vld [vmem:[#allocation6 + $0x1e8] sm:$0xff]  ;;  %v415_v58 = vld [vmem:[#allocation6 + $0x1f8] sm:$0xff] }
  0x98   : > { %1843 = vmatprep.subr.bf16.mxu0 %v1842_v20  ;;  %v2729_v20 = vsel %vm306_vm1, %v313_v35, %v315_v36  ;;  %v367_v35 = vld [vmem:[#allocation6 + $0x78] sm:$0xff]  ;;  %v1872_v36 = vpack.c.bf16 %v362_v30, %v360_v29  ;;  %v1154_v29 = vld [vmem:[#allocation8 + $0x260] sm:$0xff]  ;;  %v1156_v30 = vld [vmem:[#allocation8 + $0x270] sm:$0xff] }
  0x99   : > { %v452_v31 = vsel %vm436_vm2, %v450_v18, %v451_v19  ;;  %v1152_v18 = vld [vmem:[#allocation8 + $0x250] sm:$0xff] }
  0x9b   : > { %1845 = vmatpush1.bf16.msra.mxu0 %v1844_v28  ;;  %v448_v28 = vrot.slane %v2729_v20, 1 }
  0x9c   : > { %1847 = vmatprep.subr.bf16.mxu0 %v1846_v32  ;;  %v455_v32 = vrot.slane %v423_v24, 1  ;;  %v381_v24 = vld [vmem:[#allocation6 + $0xe8] sm:$0xff] }
  0x9d   : > { %v449_v37 = vsel %vm436_vm2, %v447_v27, %v448_v28  ;;  %v1888_v27 = vpack.c.bf16 %v378_v21, %v376_v15 }
  0x9e   : > { %v456_v42 = vsel %vm436_vm2, %v451_v19, %v455_v32  ;;  %v382_v32 = vld [vmem:[#allocation6 + $0xf0] sm:$0xff] }
  0x9f   : > { %1849 = vmatpush1.bf16.msra.mxu0 %v1848_v39  ;;  %v1874_v39 = vpack.c.bf16 %v367_v35, %v365_v34  ;;  %v1161_v34 = vld [vmem:[#allocation8 + $0x298] sm:$0xff]  ;;  %v385_v35 = vld [vmem:[#allocation6 + $0x108] sm:$0xff] }
  0xa0   : > { %1851 = vmatprep.subr.bf16.mxu0 %v1850_v40  ;;  %v364_v40 = vld [vmem:[#allocation6 + $0x60] sm:$0xff] }
  0xa3   : > { %1853 = vmatpush1.bf16.msra.mxu0 %v1852_v45  ;;  %v1876_v45 = vpack.c.bf16 %v366_v41, %v364_v40  ;;  %v2006_v40 = vpack.c.bf16 %v1161_v34, %v1159_v33  ;;  %v1158_v41 = vld [vmem:[#allocation8 + $0x280] sm:$0xff]  ;;  %v402_v33 = vld [vmem:[#allocation6 + $0x190] sm:$0xff]  ;;  %v1179_v34 = vld [vmem:[#allocation8 + $0x328] sm:$0xff] }
  0xa4   : > { %1855 = vmatprep.subr.bf16.mxu0 %v1854_v46  ;;  %v454_v46 = vsel %vm436_vm2, %v448_v28, %v453_v38  ;;  %v380_v28 = vld [vmem:[#allocation6 + $0xe0] sm:$0xff] }
  0xa5   : > { %v1892_v38 = vpack.c.bf16 %v382_v32, %v380_v28 }
  0xa7   : > { %1857 = vmatpush1.bf16.msra.mxu0 %v1856_v55  ;;  %v373_v55 = vld [vmem:[#allocation6 + $0xa8] sm:$0xff] }
  0xa8   : > { %1859 = vmatprep.subr.bf16.mxu0 %v1858_v56  ;;  %v375_v56 = vld [vmem:[#allocation6 + $0xb8] sm:$0xff] }
  0xa9   : > { %v1882_v7 = vpack.c.bf16 %v375_v56, %v373_v55  ;;  %v388_v55 = vld [vmem:[#allocation6 + $0x120] sm:$0xff] }
  0xab   : > { %1861 = vmatpush1.bf16.msra.mxu0 %v1860_v2  ;;  %v1990_v2 = vpack.c.bf16 %v1145_v62, %v1143_v61  ;;  %v390_v62 = vld [vmem:[#allocation6 + $0x130] sm:$0xff] }
  0xac   : > { %1863 = vmatprep.subr.bf16.mxu0 %v1862_v8  ;;  %v1992_v8 = vpack.c.bf16 %v1144_v4, %v1142_v63  ;;  %v1167_v63 = vld [vmem:[#allocation8 + $0x2c8] sm:$0xff]  ;;  %v395_v4 = vld [vmem:[#allocation6 + $0x158] sm:$0xff]  ;;  %v1900_v6 = vpack.c.bf16 %v390_v62, %v388_v55  ;;  %v408_v55 = vld [vmem:[#allocation6 + $0x1c0] sm:$0xff]  ;;  %v1922_v62 = vpack.c.bf16 %v415_v58, %v413_v57 }
  0xad   : > { %1991 = vmatprep.subr.bf16.mxu1 %v1990_v2  ;;  %v393_v2 = vld [vmem:[#allocation6 + $0x148] sm:$0xff]  ;;  %v782_v57 = vld [vmem:[#allocation6 + $0x4e0] sm:$0xff]  ;;  %v784_v58 = vld [vmem:[#allocation6 + $0x4f0] sm:$0xff] }
  0xae   : > { %595 = vmatmul.mubr.f32.vlgmr.msra.gmra.mrb[0].mxu0 %v439_v11  ;;  %v379_v11 = vld [vmem:[#allocation6 + $0xd8] sm:$0xff]  ;;  %1993 = vmatpush1.bf16.msra.mxu1 %v1992_v8 }
  0xaf   : > { %1865 = vmatpush1.bf16.msra.mxu0 %v1864_v12  ;;  %600 = vmatprep.mubr.f32.mxu0 %v446_v17  ;;  %v1153_v12 = vld [vmem:[#allocation8 + $0x258] sm:$0xff]  ;;  %v1150_v17 = vld [vmem:[#allocation8 + $0x240] sm:$0xff]  ;;  %v1886_v19 = vpack.c.bf16 %v379_v11, %v377_v53  ;;  %v1171_v53 = vld [vmem:[#allocation8 + $0x2e8] sm:$0xff] }
  0xb0   : > { %1867 = vmatprep.subr.bf16.mxu0 %v1866_v13  ;;  %v1996_v13 = vpack.c.bf16 %v1148_v10, %v1146_v50  ;;  %1995 = vmatprep.subr.bf16.mxu1 %v1994_v9  ;;  %v1998_v16 = vpack.c.bf16 %v1153_v12, %v1151_v49  ;;  %v1166_v9 = vld [vmem:[#allocation8 + $0x2c0] sm:$0xff]  ;;  %v1168_v50 = vld [vmem:[#allocation8 + $0x2d0] sm:$0xff]  ;;  %v1902_v10 = vpack.c.bf16 %v395_v4, %v393_v2  ;;  %v1173_v11 = vld [vmem:[#allocation8 + $0x2f8] sm:$0xff] }
  0xb1   : > { %v394_v49 = vld [vmem:[#allocation6 + $0x150] sm:$0xff]  ;;  %v397_v12 = vld [vmem:[#allocation6 + $0x168] sm:$0xff]  ;;  %v757_v4 = vld [vmem:[#allocation6 + $0x418] sm:$0xff] }
  0xb2   : > { %601 = vmatmul.mubr.f32.gmra.mrb[2].mxu0 %v444_v26  ;;  %1997 = vmatpush1.bf16.msra.mxu1 %v1996_v13  ;;  %v2000_v26 = vpack.c.bf16 %v1152_v18, %v1150_v17  ;;  %v399_v13 = vld [vmem:[#allocation6 + $0x178] sm:$0xff]  ;;  %v2018_v17 = vpack.c.bf16 %v1173_v11, %v1171_v53  ;;  %v1170_v18 = vld [vmem:[#allocation8 + $0x2e0] sm:$0xff]  ;;  %v755_v2 = vld [vmem:[#allocation6 + $0x408] sm:$0xff] }
  0xb3   : > { %1869 = vmatpush1.bf16.msra.mxu0 %v1868_v25  ;;  %606 = vmatprep.mubr.f32.mxu0 %v452_v31  ;;  %v383_v25 = vld [vmem:[#allocation6 + $0xf8] sm:$0xff]  ;;  %v1906_v21 = vpack.c.bf16 %v399_v13, %v397_v12  ;;  %v758_v11 = vld [vmem:[#allocation6 + $0x420] sm:$0xff]  ;;  %v760_v12 = vld [vmem:[#allocation6 + $0x430] sm:$0xff] }
  0xb4   : > { %1871 = vmatprep.subr.bf16.mxu0 %v1870_v3  ;;  %1999 = vmatprep.subr.bf16.mxu1 %v1998_v16  ;;  %v2002_v3 = vpack.c.bf16 %v1157_v23, %v1155_v22  ;;  %v1890_v31 = vpack.c.bf16 %v383_v25, %v381_v24  ;;  %v396_v16 = vld [vmem:[#allocation6 + $0x160] sm:$0xff]  ;;  %v398_v22 = vld [vmem:[#allocation6 + $0x170] sm:$0xff]  ;;  %v1175_v23 = vld [vmem:[#allocation8 + $0x308] sm:$0xff] }
  0xb5   : > { %v1177_v24 = vld [vmem:[#allocation8 + $0x318] sm:$0xff]  ;;  %v401_v25 = vld [vmem:[#allocation6 + $0x188] sm:$0xff]  ;;  %v1908_v28 = vpack.c.bf16 %v398_v22, %v396_v16 }
  0xb6   : > { %607 = vmatmul.mubr.f32.gmra.mrb[4].mxu0 %v449_v37  ;;  %2001 = vmatpush1.bf16.msra.mxu1 %v2000_v26  ;;  %v2004_v37 = vpack.c.bf16 %v1156_v30, %v1154_v29  ;;  %v403_v26 = vld [vmem:[#allocation6 + $0x198] sm:$0xff]  ;;  %v2022_v29 = vpack.c.bf16 %v1177_v24, %v1175_v23  ;;  %v1174_v30 = vld [vmem:[#allocation8 + $0x300] sm:$0xff]  ;;  %v763_v13 = vld [vmem:[#allocation6 + $0x448] sm:$0xff] }
  0xb7   : > { %1873 = vmatpush1.bf16.msra.mxu0 %v1872_v36  ;;  %612 = vmatprep.mubr.f32.mxu0 %v456_v42  ;;  %v387_v36 = vld [vmem:[#allocation6 + $0x118] sm:$0xff]  ;;  %v1160_v42 = vld [vmem:[#allocation8 + $0x290] sm:$0xff]  ;;  %v1910_v32 = vpack.c.bf16 %v403_v26, %v401_v25  ;;  %v709_v23 = vld [vmem:[#allocation2 + $0x8] sm:$0xfc] }
  0xb8   : > { %1875 = vmatprep.subr.bf16.mxu0 %v1874_v39  ;;  %v384_v39 = vld [vmem:[#allocation6 + $0x100] sm:$0xff]  ;;  %2003 = vmatprep.subr.bf16.mxu1 %v2002_v3  ;;  %v1894_v43 = vpack.c.bf16 %v387_v36, %v385_v35  ;;  %v2008_v52 = vpack.c.bf16 %v1160_v42, %v1158_v41  ;;  %v1181_v35 = vld [vmem:[#allocation8 + $0x338] sm:$0xff]  ;;  %v405_v36 = vld [vmem:[#allocation6 + $0x1a8] sm:$0xff] }
  0xb9   : > { %v400_v3 = vld [vmem:[#allocation6 + $0x180] sm:$0xff]  ;;  %v1180_v42 = vld [vmem:[#allocation8 + $0x330] sm:$0xff]  ;;  %v769_v22 = vld [vmem:[#allocation6 + $0x478] sm:$0xff] }
  0xba   : > { %613 = vmatmul.mubr.f32.gmra.mrb[6].mxu0 %v454_v46  ;;  %v1165_v46 = vld [vmem:[#allocation8 + $0x2b8] sm:$0xff]  ;;  %2005 = vmatpush1.bf16.msra.mxu1 %v2004_v37  ;;  %v1178_v41 = vld [vmem:[#allocation8 + $0x320] sm:$0xff]  ;;  %v348_v25 = vld [vmem:[#allocation2 + $0x30] sm:$0xff] }
  0xbb   : > { %1877 = vmatpush1.bf16.msra.mxu0 %v1876_v45  ;;  %683 = vmatprep.mubr.f32.mxu0 %v345_v54  ;;  %v1163_v45 = vld [vmem:[#allocation8 + $0x2a8] sm:$0xff]  ;;  %v1896_v54 = vpack.c.bf16 %v386_v44, %v384_v39  ;;  %v407_v37 = vld [vmem:[#allocation6 + $0x1b8] sm:$0xff]  ;;  %v1912_v39 = vpack.c.bf16 %v402_v33, %v400_v3  ;;  %v404_v44 = vld [vmem:[#allocation6 + $0x1a0] sm:$0xff]  ;;  %v728_v3 = vrot.slane %v709_v23, 2 }
  0xbc   : > { %1879 = vmatprep.subr.bf16.mxu0 %v1878_v47  ;;  %v389_v47 = vld [vmem:[#allocation6 + $0x128] sm:$0xff]  ;;  %2007 = vmatprep.subr.bf16.mxu1 %v2006_v40  ;;  %v2010_v56 = vpack.c.bf16 %v1165_v46, %v1163_v45  ;;  %v2026_v40 = vpack.c.bf16 %v1181_v35, %v1179_v34  ;;  %v406_v45 = vld [vmem:[#allocation6 + $0x1b0] sm:$0xff]  ;;  %v770_v34 = vld [vmem:[#allocation6 + $0x480] sm:$0xff] }
  0xbd   : > { %v1898_v61 = vpack.c.bf16 %v391_v48, %v389_v47  ;;  %v409_v46 = vld [vmem:[#allocation6 + $0x1c8] sm:$0xff]  ;;  %v411_v47 = vld [vmem:[#allocation6 + $0x1d8] sm:$0xff]  ;;  %v2028_v48 = vpack.c.bf16 %v1180_v42, %v1178_v41  ;;  %v772_v35 = vld [vmem:[#allocation6 + $0x490] sm:$0xff] }
  0xbe   : > { %2009 = vmatpush1.bf16.msra.mxu1 %v2008_v52  ;;  %v1916_v52 = vpack.c.bf16 %v406_v45, %v404_v44  ;;  %v774_v41 = vld [vmem:[#allocation6 + $0x4a0] sm:$0xff]  ;;  %v776_v42 = vld [vmem:[#allocation6 + $0x4b0] sm:$0xff]  ;;  %v781_v44 = vld [vmem:[#allocation6 + $0x4d8] sm:$0xff] }
  0xbf   : > { %1881 = vmatpush1.bf16.msra.mxu0 %v1880_v1  ;;  %v1169_v1 = vld [vmem:[#allocation8 + $0x2d8] sm:$0xff]  ;;  %2011 = vmatprep.subr.bf16.mxu1 %v2010_v56  ;;  %v410_v56 = vld [vmem:[#allocation6 + $0x1d0] sm:$0xff]  ;;  %v1948_v45 = vpack.c.bf16 %v776_v42, %v774_v41 }
  0xc0   : > { %1883 = vmatprep.subr.bf16.mxu0 %v1882_v7  ;;  %v392_v7 = vld [vmem:[#allocation6 + $0x140] sm:$0xff]  ;;  %v2014_v8 = vpack.c.bf16 %v1169_v1, %v1167_v63  ;;  %v414_v1 = vld [vmem:[#allocation6 + $0x1f0] sm:$0xff] }
  0xc1   : > { %v1904_v15 = vpack.c.bf16 %v394_v49, %v392_v7  ;;  %v412_v63 = vld [vmem:[#allocation6 + $0x1e0] sm:$0xff] }
  0xc2   : > { %2013 = vmatpush1.bf16.msra.mxu1 %v2012_v5  ;;  %v1924_v5 = vpack.c.bf16 %v414_v1, %v412_v63  ;;  %v754_v7 = vld [vmem:[#allocation6 + $0x400] sm:$0xff]  ;;  %v1956_v63 = vpack.c.bf16 %v784_v58, %v782_v57 }
  0xc3   : > { %1885 = vmatpush1.bf16.msra.mxu0 %v1884_v14  ;;  %v2016_v14 = vpack.c.bf16 %v1168_v50, %v1166_v9  ;;  %2015 = vmatprep.subr.bf16.mxu1 %v2014_v8  ;;  %v756_v8 = vld [vmem:[#allocation6 + $0x410] sm:$0xff]  ;;  %v759_v9 = vld [vmem:[#allocation6 + $0x428] sm:$0xff]  ;;  %v761_v50 = vld [vmem:[#allocation6 + $0x438] sm:$0xff] }
  0xc4   : > { %1887 = vmatprep.subr.bf16.mxu0 %v1886_v19  ;;  %v1172_v19 = vld [vmem:[#allocation8 + $0x2f0] sm:$0xff]  ;;  %v1928_v49 = vpack.c.bf16 %v756_v8, %v754_v7  ;;  %v1930_v53 = vpack.c.bf16 %v761_v50, %v759_v9  ;;  %v790_v9 = vld [vmem:[#allocation6 + $0x520] sm:$0xff] }
  0xc5   : > { %v792_v50 = vld [vmem:[#allocation6 + $0x530] sm:$0xff] }
  0xc6   : > { %2017 = vmatpush1.bf16.msra.mxu1 %v2016_v14  ;;  %v765_v14 = vld [vmem:[#allocation6 + $0x458] sm:$0xff] }
  0xc7   : > { %1889 = vmatpush1.bf16.msra.mxu0 %v1888_v27  ;;  %v2020_v27 = vpack.c.bf16 %v1172_v19, %v1170_v18  ;;  %2019 = vmatprep.subr.bf16.mxu1 %v2018_v17  ;;  %v1934_v16 = vpack.c.bf16 %v765_v14, %v763_v13  ;;  %v762_v17 = vld [vmem:[#allocation6 + $0x440] sm:$0xff]  ;;  %v764_v18 = vld [vmem:[#allocation6 + $0x450] sm:$0xff]  ;;  %v349_v19 = vld [vmem:[#allocation2 + $0x38] sm:$0xff] }
  0xc8   : > { %1891 = vmatprep.subr.bf16.mxu0 %v1890_v31  ;;  %v1176_v31 = vld [vmem:[#allocation8 + $0x310] sm:$0xff]  ;;  %v1936_v24 = vpack.c.bf16 %v764_v18, %v762_v17  ;;  %v799_v14 = vld [vmem:[#allocation6 + $0x568] sm:$0xff]  ;;  %v798_v18 = vld [vmem:[#allocation6 + $0x560] sm:$0xff] }
  0xc9   : > { %v796_v13 = vld [vmem:[#allocation6 + $0x550] sm:$0xff] }
  0xca   : > { %2021 = vmatpush1.bf16.msra.mxu1 %v2020_v27  ;;  %v766_v27 = vld [vmem:[#allocation6 + $0x460] sm:$0xff] }
  0xcb   : > { %1893 = vmatpush1.bf16.msra.mxu0 %v1892_v38  ;;  %v2024_v38 = vpack.c.bf16 %v1176_v31, %v1174_v30  ;;  %2023 = vmatprep.subr.bf16.mxu1 %v2022_v29  ;;  %v729_v29 = vrot.slane %v2696_v59, 2  ;;  %v771_v30 = vld [vmem:[#allocation6 + $0x488] sm:$0xff]  ;;  %v773_v31 = vld [vmem:[#allocation6 + $0x498] sm:$0xff] }
  0xcc   : > { %1895 = vmatprep.subr.bf16.mxu0 %v1894_v43  ;;  %v1914_v43 = vpack.c.bf16 %v407_v37, %v405_v36  ;;  %v1942_v33 = vpack.c.bf16 %v773_v31, %v771_v30  ;;  %v775_v37 = vld [vmem:[#allocation6 + $0x4a8] sm:$0xff]  ;;  %v806_v31 = vld [vmem:[#allocation6 + $0x5a0] sm:$0xff] }
  0xcd   : > { %v730_v36 = vsel %vm724_vm3, %v728_v3, %v729_v29 }
  0xce   : > { %2025 = vmatpush1.bf16.msra.mxu1 %v2024_v38  ;;  %v777_v38 = vld [vmem:[#allocation6 + $0x4b8] sm:$0xff] }
  0xcf   : > { %1897 = vmatpush1.bf16.msra.mxu0 %v1896_v54  ;;  %2027 = vmatprep.subr.bf16.mxu1 %v2026_v40  ;;  %v1918_v54 = vpack.c.bf16 %v411_v47, %v409_v46  ;;  %v1946_v40 = vpack.c.bf16 %v777_v38, %v775_v37  ;;  %v778_v47 = vld [vmem:[#allocation6 + $0x4c0] sm:$0xff]  ;;  %v812_v38 = vld [vmem:[#allocation6 + $0x5d0] sm:$0xff] }
  0xd0   : > { %1899 = vmatprep.subr.bf16.mxu0 %v1898_v61  ;;  %v1920_v61 = vpack.c.bf16 %v410_v56, %v408_v55  ;;  %v810_v37 = vld [vmem:[#allocation6 + $0x5c0] sm:$0xff] }
  0xd1   : > { %v1984_v41 = vpack.c.bf16 %v812_v38, %v810_v37  ;;  %v1203_v37 = vld [vmem:[#allocation8 + $0x3e8] sm:$0xff]  ;;  %v1205_v38 = vld [vmem:[#allocation8 + $0x3f8] sm:$0xff] }
  0xd2   : > { %2029 = vmatpush1.bf16.msra.mxu1 %v2028_v48  ;;  %v780_v48 = vld [vmem:[#allocation6 + $0x4d0] sm:$0xff] }
  0xd3   : > { %1901 = vmatpush1.bf16.msra.mxu0 %v1900_v6  ;;  %v1926_v6 = vpack.c.bf16 %v757_v4, %v755_v2  ;;  %v1952_v55 = vpack.c.bf16 %v780_v48, %v778_v47  ;;  %v786_v2 = vld [vmem:[#allocation6 + $0x500] sm:$0xff]  ;;  %v788_v4 = vld [vmem:[#allocation6 + $0x510] sm:$0xff] }
  0xd4   : > { %1903 = vmatprep.subr.bf16.mxu0 %v1902_v10  ;;  %v344_v10 = vld [vmem:[#allocation2] sm:$0xff]  ;;  %v1960_v7 = vpack.c.bf16 %v788_v4, %v786_v2  ;;  %v715_v2 = vld [vmem:[#allocation2 + $0x58] sm:$0x3] }
  0xd7   : > { %1905 = vmatpush1.bf16.msra.mxu0 %v1904_v15  ;;  %v1932_v15 = vpack.c.bf16 %v760_v12, %v758_v11  ;;  %v794_v12 = vld [vmem:[#allocation6 + $0x540] sm:$0xff] }
  0xd8   : > { %1907 = vmatprep.subr.bf16.mxu0 %v1906_v21  ;;  %v767_v21 = vld [vmem:[#allocation6 + $0x468] sm:$0xff] }
  0xd9   : > { %v1938_v26 = vpack.c.bf16 %v769_v22, %v767_v21  ;;  %v803_v21 = vld [vmem:[#allocation6 + $0x588] sm:$0xff]  ;;  %v805_v22 = vld [vmem:[#allocation6 + $0x598] sm:$0xff] }
  0xdb   : > { %1909 = vmatpush1.bf16.msra.mxu0 %v1908_v28  ;;  %v768_v28 = vld [vmem:[#allocation6 + $0x470] sm:$0xff] }
  0xdc   : > { %1911 = vmatprep.subr.bf16.mxu0 %v1910_v32  ;;  %v1940_v32 = vpack.c.bf16 %v768_v28, %v766_v27  ;;  %v807_v27 = vld [vmem:[#allocation6 + $0x5a8] sm:$0xff]  ;;  %v809_v28 = vld [vmem:[#allocation6 + $0x5b8] sm:$0xff] }
  0xdd   : > { %v1978_v30 = vpack.c.bf16 %v809_v28, %v807_v27  ;;  %v1194_v28 = vld [vmem:[#allocation8 + $0x3a0] sm:$0xff] }
  0xdf   : > { %1913 = vmatpush1.bf16.msra.mxu0 %v1912_v39  ;;  %v1944_v39 = vpack.c.bf16 %v772_v35, %v770_v34  ;;  %v813_v34 = vld [vmem:[#allocation6 + $0x5d8] sm:$0xff] }
  0xe0   : > { %1915 = vmatprep.subr.bf16.mxu0 %v1914_v43  ;;  %v779_v43 = vld [vmem:[#allocation6 + $0x4c8] sm:$0xff] }
  0xe1   : > { %v1950_v46 = vpack.c.bf16 %v781_v44, %v779_v43  ;;  %v814_v43 = vld [vmem:[#allocation6 + $0x5e0] sm:$0xff]  ;;  %v816_v44 = vld [vmem:[#allocation6 + $0x5f0] sm:$0xff] }
  0xe2   : > { %v1988_v47 = vpack.c.bf16 %v816_v44, %v814_v43  ;;  %v1030_v43 = vld [vmem:[#allocation8 + $0x8] sm:$0xff]  ;;  %v1032_v44 = vld [vmem:[#allocation8 + $0x18] sm:$0xff] }
  0xe3   : > { %1917 = vmatpush1.bf16.msra.mxu0 %v1916_v52  ;;  %v783_v52 = vld [vmem:[#allocation6 + $0x4e8] sm:$0xff] }
  0xe4   : > { %1919 = vmatprep.subr.bf16.mxu0 %v1918_v54  ;;  %v785_v54 = vld [vmem:[#allocation6 + $0x4f8] sm:$0xff] }
  0xe5   : > { %v1954_v56 = vpack.c.bf16 %v785_v54, %v783_v52  ;;  %v726_v52 = vrot.slane %v2717_v60, 2 }
  0xe7   : > { %1921 = vmatpush1.bf16.msra.mxu0 %v1920_v61  ;;  %v787_v61 = vld [vmem:[#allocation6 + $0x508] sm:$0xff] }
  0xe8   : > { %1923 = vmatprep.subr.bf16.mxu0 %v1922_v62  ;;  %v789_v62 = vld [vmem:[#allocation6 + $0x518] sm:$0xff] }
  0xe9   : > { %v1958_v1 = vpack.c.bf16 %v789_v62, %v787_v61 }
  0xeb   : > { %1925 = vmatpush1.bf16.msra.mxu0 %v1924_v5  ;;  %v791_v5 = vld [vmem:[#allocation6 + $0x528] sm:$0xff] }
  0xec   : > { %1927 = vmatprep.subr.bf16.mxu0 %v1926_v6  ;;  %v793_v6 = vld [vmem:[#allocation6 + $0x538] sm:$0xff] }
  0xed   : > { %v1962_v8 = vpack.c.bf16 %v793_v6, %v791_v5  ;;  %v736_v5 = vrot.slane %v2729_v20, 2 }
  0xee   : > { %684 = vmatmul.mubr.f32.vlgmr.msra.gmra.mrb[0].mxu0 %v344_v10  ;;  %v795_v10 = vld [vmem:[#allocation6 + $0x548] sm:$0xff] }
  0xef   : > { %1929 = vmatpush1.bf16.msra.mxu0 %v1928_v49  ;;  %689 = vmatprep.mubr.f32.mxu0 %v2696_v59  ;;  %v797_v49 = vld [vmem:[#allocation6 + $0x558] sm:$0xff] }
  0xf0   : > { %1931 = vmatprep.subr.bf16.mxu0 %v1930_v53  ;;  %v1964_v53 = vpack.c.bf16 %v792_v50, %v790_v9  ;;  %v1966_v11 = vpack.c.bf16 %v797_v49, %v795_v10  ;;  %v1183_v50 = vld [vmem:[#allocation8 + $0x348] sm:$0xff]  ;;  %v1185_v10 = vld [vmem:[#allocation8 + $0x358] sm:$0xff] }
  0xf1   : > { %v2030_v49 = vpack.c.bf16 %v1185_v10, %v1183_v50 }
  0xf2   : > { %690 = vmatmul.mubr.f32.gmra.mrb[2].mxu0 %v2717_v60 }
  0xf3   : > { %1933 = vmatpush1.bf16.msra.mxu0 %v1932_v15  ;;  %695 = vmatprep.mubr.f32.mxu0 %v349_v19  ;;  %v801_v15 = vld [vmem:[#allocation6 + $0x578] sm:$0xff]  ;;  %v800_v19 = vld [vmem:[#allocation6 + $0x570] sm:$0xff] }
  0xf4   : > { %1935 = vmatprep.subr.bf16.mxu0 %v1934_v16  ;;  %v1968_v16 = vpack.c.bf16 %v796_v13, %v794_v12  ;;  %v1970_v17 = vpack.c.bf16 %v801_v15, %v799_v14  ;;  %v1972_v23 = vpack.c.bf16 %v800_v19, %v798_v18  ;;  %2031 = vmatprep.subr.bf16.mxu1 %v2030_v49  ;;  %v1187_v12 = vld [vmem:[#allocation8 + $0x368] sm:$0xff]  ;;  %v1189_v13 = vld [vmem:[#allocation8 + $0x378] sm:$0xff]  ;;  %v1186_v15 = vld [vmem:[#allocation8 + $0x360] sm:$0xff] }
  0xf5   : > { %v2034_v14 = vpack.c.bf16 %v1189_v13, %v1187_v12  ;;  %v1191_v18 = vld [vmem:[#allocation8 + $0x388] sm:$0xff]  ;;  %v1193_v19 = vld [vmem:[#allocation8 + $0x398] sm:$0xff] }
  0xf6   : > { %696 = vmatmul.mubr.f32.gmra.mrb[4].mxu0 %v348_v25  ;;  %v802_v25 = vld [vmem:[#allocation6 + $0x580] sm:$0xff] }
  0xf7   : > { %1937 = vmatpush1.bf16.msra.mxu0 %v1936_v24  ;;  %701 = vmatprep.mubr.f32.mxu0 %v2721_v51  ;;  %v1974_v24 = vpack.c.bf16 %v805_v22, %v803_v21  ;;  %v2038_v21 = vpack.c.bf16 %v1193_v19, %v1191_v18  ;;  %v1190_v22 = vld [vmem:[#allocation8 + $0x380] sm:$0xff] }
  0xf8   : > { %1939 = vmatprep.subr.bf16.mxu0 %v1938_v26  ;;  %v804_v26 = vld [vmem:[#allocation6 + $0x590] sm:$0xff] }
  0xf9   : > { %v1976_v3 = vpack.c.bf16 %v804_v26, %v802_v25  ;;  %v1195_v25 = vld [vmem:[#allocation8 + $0x3a8] sm:$0xff]  ;;  %v1197_v26 = vld [vmem:[#allocation8 + $0x3b8] sm:$0xff] }
  0xfa   : > { %702 = vmatmul.mubr.f32.gmra.mrb[6].mxu0 %v2729_v20  ;;  %v1182_v20 = vld [vmem:[#allocation8 + $0x340] sm:$0xff]  ;;  %v2042_v27 = vpack.c.bf16 %v1197_v26, %v1195_v25 }
  0xfb   : > { %1941 = vmatpush1.bf16.msra.mxu0 %v1940_v32  ;;  %882 = vmatprep.mubr.f32.mxu0 %v730_v36  ;;  %v808_v32 = vld [vmem:[#allocation6 + $0x5b0] sm:$0xff] }
  0xfc   : > { %1943 = vmatprep.subr.bf16.mxu0 %v1942_v33  ;;  %v811_v33 = vld [vmem:[#allocation6 + $0x5c8] sm:$0xff]  ;;  %v1980_v35 = vpack.c.bf16 %v808_v32, %v806_v31  ;;  %v1201_v32 = vld [vmem:[#allocation8 + $0x3d8] sm:$0xff] }
  0xfd   : > { %v1982_v36 = vpack.c.bf16 %v813_v34, %v811_v33  ;;  %v1199_v31 = vld [vmem:[#allocation8 + $0x3c8] sm:$0xff]  ;;  %v1198_v34 = vld [vmem:[#allocation8 + $0x3c0] sm:$0xff] }
  0xfe   : > { %v2046_v33 = vpack.c.bf16 %v1201_v32, %v1199_v31 }
  0xff   : > { %1945 = vmatpush1.bf16.msra.mxu0 %v1944_v39  ;;  %v815_v39 = vld [vmem:[#allocation6 + $0x5e8] sm:$0xff] }
 0x100   : > { %1947 = vmatprep.subr.bf16.mxu0 %v1946_v40  ;;  %v817_v40 = vld [vmem:[#allocation6 + $0x5f8] sm:$0xff] }
 0x101   : > { %v1986_v42 = vpack.c.bf16 %v817_v40, %v815_v39  ;;  %v2050_v39 = vpack.c.bf16 %v1205_v38, %v1203_v37  ;;  %v1202_v40 = vld [vmem:[#allocation8 + $0x3e0] sm:$0xff] }
 0x103   : > { %1949 = vmatpush1.bf16.msra.mxu0 %v1948_v45  ;;  %v708_v45 = vld [vmem:[#allocation2] sm:$0xfc] }
 0x104   : > { %1951 = vmatprep.subr.bf16.mxu0 %v1950_v46  ;;  %v711_v46 = vld [vmem:[#allocation2 + $0x28] sm:$0x3]  ;;  %v725_v48 = vrot.slane %v708_v45, 2  ;;  %v2054_v45 = vpack.c.bf16 %v1032_v44, %v1030_v43 }
 0x105   : > { %v733_v54 = vrot.slane %v711_v46, 2  ;;  %v2758_v46 = vshrl.u32 %v283_v0, 7 }
 0x106   : > { %v727_v57 = vsel %vm724_vm3, %v725_v48, %v726_v52  ;;  %v343_v48 = vld [vmem:[%s2911_s3] sm:$0xf] }
 0x107   : > { %1953 = vmatpush1.bf16.msra.mxu0 %v1952_v55  ;;  %v710_v55 = vld [vmem:[#allocation2 + $0x20] sm:$0x3]  ;;  %v734_v61 = vsel %vm724_vm3, %v729_v29, %v733_v54  ;;  %v2768_v54 = vsub.s32 1, %v2758_v46 }
 0x108   : > { %1955 = vmatprep.subr.bf16.mxu0 %v1954_v56  ;;  %v713_v56 = vld [vmem:[#allocation2 + $0x38] sm:$0xfc]  ;;  %v731_v58 = vrot.slane %v710_v55, 2  ;;  %v948_v55 = vsub.s32 3, %v2758_v46 }
 0x109   : > { %v738_v62 = vrot.slane %v713_v56, 2 }
 0x10a   : > { %v732_v60 = vsel %vm724_vm3, %v726_v52, %v731_v58  ;;  %v922_v52 = vsub.s32 2, %v2758_v46  ;;  %v949_v58 = vrot.slane %v343_v48, %v948_v55 }
 0x10b   : > { %1957 = vmatpush1.bf16.msra.mxu0 %v1956_v63  ;;  %v739_v63 = vrot.slane %v2721_v51, 2 }
 0x10c   : > { %1959 = vmatprep.subr.bf16.mxu0 %v1958_v1  ;;  %v712_v1 = vld [vmem:[#allocation2 + $0x30] sm:$0xfc]  ;;  %v923_v0 = vrot.slane %v343_v48, %v922_v52 }
 0x10d   : > { %v735_v4 = vrot.slane %v712_v1, 2  ;;  %v740_v6 = vsel %vm724_vm3, %v738_v62, %v739_v63 }
 0x10f   : > { %1961 = vmatpush1.bf16.msra.mxu0 %v1960_v7  ;;  %v743_v7 = vrot.slane %v715_v2, 2  ;;  %v737_v59 = vsel %vm724_vm3, %v735_v4, %v736_v5  ;;  %v959_v2 = vrot.slane %v949_v58, %v2768_v54 }
 0x110   : > { %1963 = vmatprep.subr.bf16.mxu0 %v1962_v8  ;;  %v714_v8 = vld [vmem:[#allocation2 + $0x50] sm:$0x3] }
 0x111   : > { %v741_v29 = vrot.slane %v714_v8, 2  ;;  %v744_v51 = vsel %vm724_vm3, %v739_v63, %v743_v7 }
 0x113   : > { %1965 = vmatpush1.bf16.msra.mxu0 %v1964_v53  ;;  %v742_v9 = vsel %vm724_vm3, %v736_v5, %v741_v29  ;;  %v1184_v53 = vld [vmem:[#allocation8 + $0x350] sm:$0xff] }
 0x114   : > { %1967 = vmatprep.subr.bf16.mxu0 %v1966_v11  ;;  %v2032_v11 = vpack.c.bf16 %v1184_v53, %v1182_v20 }
 0x116   : > { %2033 = vmatpush1.bf16.msra.mxu1 %v2032_v11 }
 0x117   : > { %1969 = vmatpush1.bf16.msra.mxu0 %v1968_v16  ;;  %v1188_v16 = vld [vmem:[#allocation8 + $0x370] sm:$0xff]  ;;  %2035 = vmatprep.subr.bf16.mxu1 %v2034_v14 }
 0x118   : > { %1971 = vmatprep.subr.bf16.mxu0 %v1970_v17  ;;  %v2036_v17 = vpack.c.bf16 %v1188_v16, %v1186_v15 }
 0x11a   : > { %2037 = vmatpush1.bf16.msra.mxu1 %v2036_v17 }
 0x11b   : > { %1973 = vmatpush1.bf16.msra.mxu0 %v1972_v23  ;;  %v1192_v23 = vld [vmem:[#allocation8 + $0x390] sm:$0xff]  ;;  %2039 = vmatprep.subr.bf16.mxu1 %v2038_v21 }
 0x11c   : > { %1975 = vmatprep.subr.bf16.mxu0 %v1974_v24  ;;  %v2040_v24 = vpack.c.bf16 %v1192_v23, %v1190_v22 }
 0x11e   : > { %2041 = vmatpush1.bf16.msra.mxu1 %v2040_v24 }
 0x11f   : > { %1977 = vmatpush1.bf16.msra.mxu0 %v1976_v3  ;;  %v1196_v3 = vld [vmem:[#allocation8 + $0x3b0] sm:$0xff]  ;;  %2043 = vmatprep.subr.bf16.mxu1 %v2042_v27 }
 0x120   : > { %1979 = vmatprep.subr.bf16.mxu0 %v1978_v30  ;;  %v2044_v30 = vpack.c.bf16 %v1196_v3, %v1194_v28 }
 0x122   : > { %2045 = vmatpush1.bf16.msra.mxu1 %v2044_v30 }
 0x123   : > { %1981 = vmatpush1.bf16.msra.mxu0 %v1980_v35  ;;  %v1200_v35 = vld [vmem:[#allocation8 + $0x3d0] sm:$0xff]  ;;  %2047 = vmatprep.subr.bf16.mxu1 %v2046_v33 }
 0x124   : > { %1983 = vmatprep.subr.bf16.mxu0 %v1982_v36  ;;  %v2048_v36 = vpack.c.bf16 %v1200_v35, %v1198_v34  ;;  %v1029_v35 = vld [vmem:[#allocation8] sm:$0xff] }
 0x126   : > { %2049 = vmatpush1.bf16.msra.mxu1 %v2048_v36  ;;  %v1031_v36 = vld [vmem:[#allocation8 + $0x10] sm:$0xff] }
 0x127   : > { %1985 = vmatpush1.bf16.msra.mxu0 %v1984_v41  ;;  %v1204_v41 = vld [vmem:[#allocation8 + $0x3f0] sm:$0xff]  ;;  %2051 = vmatprep.subr.bf16.mxu1 %v2050_v39 }
 0x128   : > { %1987 = vmatprep.subr.bf16.mxu0 %v1986_v42  ;;  %v2052_v42 = vpack.c.bf16 %v1204_v41, %v1202_v40  ;;  %v1034_v40 = vld [vmem:[#allocation8 + $0x28] sm:$0xff]  ;;  %v1036_v41 = vld [vmem:[#allocation8 + $0x38] sm:$0xff] }
 0x129   : > { %v2058_v58 = vpack.c.bf16 %v1036_v41, %v1034_v40 }
 0x12a   : > { %2053 = vmatpush1.bf16.msra.mxu1 %v2052_v42 }
 0x12b   : > { %1989 = vmatpush1.bf16.msra.mxu0 %v1988_v47  ;;  %2055 = vmatprep.subr.bf16.mxu1 %v2054_v45  ;;  %v2761_v47 = vsub.s32 0, %v2758_v46  ;;  %v2286_v46 = vld [vmem:[%s2670_s12] sm:$0xff] }
 0x12d   : > { %v919_v56 = vrot.slane %v343_v48, %v2761_v47  ;;  %v933_v62 = vrot.slane %v923_v0, %v2761_v47 }
 0x12e   : > { %883 = vmatmul.mubr.f32.vlgmr.msra.gmra.mrb[0].mxu0 %v727_v57  ;;  %v945_v57 = vrot.slane %v343_v48, %v2768_v54 }
 0x12f   : > { %888 = vmatprep.mubr.f32.mxu0 %v734_v61  ;;  %v929_v61 = vrot.slane %v919_v56, %v2761_v47  ;;  %v2056_v56 = vpack.c.bf16 %v1031_v36, %v1029_v35  ;;  %v1047_v35 = vld [vmem:[#allocation8 + $0x90] sm:$0xff] }
 0x130   : > { %v955_v63 = vrot.slane %v945_v57, %v2768_v54 }
 0x132   : > { %889 = vmatmul.mubr.f32.gmra.mrb[2].mxu0 %v732_v60 }
 0x133   : > { %894 = vmatprep.mubr.f32.mxu0 %v740_v6 }
 0x136   : > { %895 = vmatmul.mubr.f32.gmra.mrb[4].mxu0 %v737_v59 }
 0x137   : > { %900 = vmatprep.mubr.f32.mxu0 %v744_v51 }
 0x13a   : > { %901 = vmatmul.mubr.f32.gmra.mrb[6].mxu0 %v742_v9 }
 0x201   : > { %v884_v1 = vpop.f32.mrb[0].mxu0 }
 0x202   : > { %v934_v60 = vmul.f32 %v929_v61, %v884_v1  ;;  %v886_v4 = vpop.f32.mrb[1].mxu0 }
 0x203   : > { %v935_v5 = vmul.f32 %v933_v62, %v886_v4 }
 0x204   : > { %v960_v6 = vadd.f32 %v955_v63, %v934_v60 }
 0x205   : > { %v961_v7 = vadd.f32 %v959_v2, %v935_v5  ;;  %v890_v8 = vpop.f32.mrb[2].mxu0  ;;  %v1038_v5 = vld [vmem:[#allocation8 + $0x48] sm:$0xff] }
 0x206   : > { %v968_v59 = vmax.f32 %v960_v6, 0.0  ;;  %v936_v29 = vmul.f32 %v929_v61, %v890_v8  ;;  %v892_v51 = vpop.f32.mrb[3].mxu0  ;;  %v1040_v6 = vld [vmem:[#allocation8 + $0x58] sm:$0xff] }
 0x207   : > { %v969_v9 = vmax.f32 %v961_v7, 0.0  ;;  %v937_v50 = vmul.f32 %v933_v62, %v892_v51  ;;  %v2062_v51 = vpack.c.bf16 %v1040_v6, %v1038_v5  ;;  %v1064_v5 = vld [vmem:[#allocation8 + $0x118] sm:$0xff] }
 0x208   : > { %v984_v10 = vrot.slane %v968_v59, 7  ;;  %v962_v49 = vadd.f32 %v955_v63, %v936_v29 }
 0x209   : > { %v985_v20 = vrot.slane %v969_v9, 7  ;;  %v963_v53 = vadd.f32 %v959_v2, %v937_v50  ;;  %v896_v11 = vpop.f32.mrb[4].mxu0  ;;  %v1037_v50 = vld [vmem:[#allocation8 + $0x40] sm:$0xff] }
 0x20a   : > { %1008 = vst [vmem:[#allocation2] sm:$0xfe] %v984_v10  ;;  %v970_v12 = vmax.f32 %v962_v49, 0.0  ;;  %v938_v13 = vmul.f32 %v929_v61, %v896_v11  ;;  %v898_v14 = vpop.f32.mrb[5].mxu0  ;;  %v1042_v11 = vld [vmem:[#allocation8 + $0x68] sm:$0xff] }
 0x20b   : > { %1009 = vst [vmem:[#allocation2 + $0x8] sm:$0xfe] %v985_v20  ;;  %v971_v15 = vmax.f32 %v963_v53, 0.0  ;;  %v939_v16 = vmul.f32 %v933_v62, %v898_v14 }
 0x20c   : > { %v986_v17 = vrot.slane %v970_v12, 7  ;;  %v964_v18 = vadd.f32 %v955_v63, %v938_v13  ;;  %v1044_v12 = vld [vmem:[#allocation8 + $0x78] sm:$0xff] }
 0x20d   : > { %v988_v19 = vrot.slane %v971_v15, 7  ;;  %v965_v21 = vadd.f32 %v959_v2, %v939_v16  ;;  %v902_v22 = vpop.f32.mrb[6].mxu0 }
 0x20e   : > { %v2782_v23 = vsel %vm306_vm1, %v984_v10, %v986_v17  ;;  %1012 = vst [vmem:[#allocation2 + $0x20] sm:$0x1] %v986_v17  ;;  %v972_v24 = vmax.f32 %v964_v18, 0.0  ;;  %v940_v25 = vmul.f32 %v929_v61, %v902_v22  ;;  %v904_v26 = vpop.f32.mrb[7].mxu0  ;;  %v1039_v10 = vld [vmem:[#allocation8 + $0x50] sm:$0xff]  ;;  %v2066_v18 = vpack.c.bf16 %v1044_v12, %v1042_v11  ;;  %v1072_v11 = vld [vmem:[#allocation8 + $0x158] sm:$0xff] }
 0x20f   : > { %v2785_v27 = vsel %vm306_vm1, %v985_v20, %v988_v19  ;;  %1013 = vst [vmem:[#allocation2 + $0x28] sm:$0x1] %v988_v19  ;;  %v973_v28 = vmax.f32 %v965_v21, 0.0  ;;  %v941_v3 = vmul.f32 %v933_v62, %v904_v26  ;;  %v1114_v48 = vrot.slane %v2782_v23, 1  ;;  %v1033_v62 = vld [vmem:[#allocation8 + $0x20] sm:$0xff]  ;;  %v1043_v22 = vld [vmem:[#allocation8 + $0x70] sm:$0xff] }
 0x210   : > { %v990_v30 = vrot.slane %v972_v24, 7  ;;  %v966_v31 = vadd.f32 %v955_v63, %v940_v25  ;;  %v1117_v44 = vrot.slane %v2785_v27, 1  ;;  %v1035_v63 = vld [vmem:[#allocation8 + $0x30] sm:$0xff]  ;;  %v2064_v16 = vpack.c.bf16 %v1039_v10, %v1037_v50  ;;  %v1041_v21 = vld [vmem:[#allocation8 + $0x60] sm:$0xff] }
 0x211   : > { %v991_v32 = vrot.slane %v973_v28, 7  ;;  %v967_v33 = vadd.f32 %v959_v2, %v941_v3  ;;  %v1093_v34 = vld [vmem:[#allocation2] sm:$0xfe]  ;;  %v2060_v59 = vpack.c.bf16 %v1035_v63, %v1033_v62  ;;  %v1046_v28 = vld [vmem:[#allocation8 + $0x88] sm:$0xff]  ;;  %v1048_v3 = vld [vmem:[#allocation8 + $0x98] sm:$0xff] }
 0x212   : > { %1014 = vst [vmem:[#allocation2 + $0x30] sm:$0xfe] %v990_v30  ;;  %v974_v37 = vmax.f32 %v966_v31, 0.0  ;;  %v1094_v38 = vld [vmem:[#allocation2 + $0x8] sm:$0xfe]  ;;  %v1113_v39 = vrot.slane %v1093_v34, 1  ;;  %v2068_v31 = vpack.c.bf16 %v1043_v22, %v1041_v21 }
 0x213   : > { %1015 = vst [vmem:[#allocation2 + $0x38] sm:$0xfe] %v991_v32  ;;  %v975_v42 = vmax.f32 %v967_v33, 0.0  ;;  %v1116_v43 = vrot.slane %v1094_v38, 1  ;;  %v2070_v33 = vpack.c.bf16 %v1048_v3, %v1046_v28  ;;  %v1045_v34 = vld [vmem:[#allocation8 + $0x80] sm:$0xff]  ;;  %v1052_v38 = vld [vmem:[#allocation8 + $0xb8] sm:$0xff] }
 0x214   : > { %v992_v45 = vrot.slane %v974_v37, 7  ;;  %v1115_v2 = vsel %vm436_vm2, %v1113_v39, %v1114_v48  ;;  %v1050_v37 = vld [vmem:[#allocation8 + $0xa8] sm:$0xff]  ;;  %v2072_v40 = vpack.c.bf16 %v1047_v35, %v1045_v34  ;;  %v1073_v21 = vld [vmem:[#allocation8 + $0x160] sm:$0xff]  ;;  %v1075_v22 = vld [vmem:[#allocation8 + $0x170] sm:$0xff] }
 0x215   : > { %v994_v0 = vrot.slane %v975_v42, 7  ;;  %v1118_v57 = vsel %vm436_vm2, %v1116_v43, %v1117_v44  ;;  %v1095_v61 = vld [vmem:[#allocation2 + $0x20] sm:$0x1]  ;;  %v1022_v39 = vld [vmem:[#allocation2 + $0x8] sm:$0xff]  ;;  %v2074_v41 = vpack.c.bf16 %v1052_v38, %v1050_v37  ;;  %v1051_v43 = vld [vmem:[#allocation8 + $0xb0] sm:$0xff] }
 0x216   : > { %v2791_v1 = vsel %vm306_vm1, %v990_v30, %v992_v45  ;;  %1018 = vst [vmem:[#allocation2 + $0x50] sm:$0x1] %v992_v45  ;;  %1270 = vmatprep.mubr.f32.mxu1 %v1118_v57  ;;  %v1096_v60 = vld [vmem:[#allocation2 + $0x28] sm:$0x1]  ;;  %v1119_v4 = vrot.slane %v1095_v61, 1  ;;  %v1049_v42 = vld [vmem:[#allocation8 + $0xa0] sm:$0xff] }
 0x217   : > { %v2795_v7 = vsel %vm306_vm1, %v991_v32, %v994_v0  ;;  %1019 = vst [vmem:[#allocation2 + $0x58] sm:$0x1] %v994_v0  ;;  %1271 = vmatmul.mubr.f32.vlgmr.msra.gmra.mrb[0].mxu1 %v1115_v2  ;;  %v1121_v8 = vrot.slane %v1096_v60, 1  ;;  %v1124_v15 = vrot.slane %v2791_v1, 1  ;;  %v1056_v45 = vld [vmem:[#allocation8 + $0xd8] sm:$0xff]  ;;  %v1053_v0 = vld [vmem:[#allocation8 + $0xc0] sm:$0xff] }
 0x218   : > { %2057 = vmatpush1.bf16.msra.mxu1 %v2056_v56  ;;  %v1120_v49 = vsel %vm436_vm2, %v1114_v48, %v1119_v4  ;;  %v1127_v14 = vrot.slane %v2795_v7, 1  ;;  %v2076_v48 = vpack.c.bf16 %v1051_v43, %v1049_v42  ;;  %v1055_v57 = vld [vmem:[#allocation8 + $0xd0] sm:$0xff]  ;;  %v1060_v61 = vld [vmem:[#allocation8 + $0xf8] sm:$0xff]  ;;  %v1057_v2 = vld [vmem:[#allocation8 + $0xe0] sm:$0xff] }
 0x219   : > { %v1122_v29 = vsel %vm436_vm2, %v1117_v44, %v1121_v8  ;;  %2059 = vmatprep.subr.bf16.mxu1 %v2058_v58  ;;  %v1097_v9 = vld [vmem:[#allocation2 + $0x30] sm:$0xfe]  ;;  %v1054_v44 = vld [vmem:[#allocation8 + $0xc8] sm:$0xff]  ;;  %v2080_v62 = vpack.c.bf16 %v1055_v57, %v1053_v0  ;;  %v1077_v3 = vld [vmem:[#allocation8 + $0x180] sm:$0xff] }
 0x21a   : > { %1276 = vmatprep.mubr.f32.mxu1 %v1122_v29  ;;  %v1098_v20 = vld [vmem:[#allocation2 + $0x38] sm:$0xfe]  ;;  %v1123_v53 = vrot.slane %v1097_v9, 1  ;;  %v2078_v56 = vpack.c.bf16 %v1056_v45, %v1054_v44  ;;  %v1058_v58 = vld [vmem:[#allocation8 + $0xe8] sm:$0xff]  ;;  %v1059_v60 = vld [vmem:[#allocation8 + $0xf0] sm:$0xff] }
 0x21b   : > { %1277 = vmatmul.mubr.f32.gmra.mrb[2].mxu1 %v1120_v49  ;;  %v1126_v13 = vrot.slane %v1098_v20, 1  ;;  %v2082_v63 = vpack.c.bf16 %v1060_v61, %v1058_v58  ;;  %v1062_v4 = vld [vmem:[#allocation8 + $0x108] sm:$0xff]  ;;  %v2084_v6 = vpack.c.bf16 %v1059_v60, %v1057_v2  ;;  %v1063_v29 = vld [vmem:[#allocation8 + $0x110] sm:$0xff]  ;;  %v1068_v9 = vld [vmem:[#allocation8 + $0x138] sm:$0xff] }
 0x21c   : > { %2061 = vmatpush1.bf16.msra.mxu1 %v2060_v59  ;;  %v1125_v24 = vsel %vm436_vm2, %v1123_v53, %v1124_v15  ;;  %v2086_v8 = vpack.c.bf16 %v1064_v5, %v1062_v4  ;;  %v1061_v59 = vld [vmem:[#allocation8 + $0x100] sm:$0xff]  ;;  %v1067_v20 = vld [vmem:[#allocation8 + $0x130] sm:$0xff]  ;;  %v1070_v53 = vld [vmem:[#allocation8 + $0x148] sm:$0xff] }
 0x21d   : > { %v1128_v17 = vsel %vm436_vm2, %v1126_v13, %v1127_v14  ;;  %2063 = vmatprep.subr.bf16.mxu1 %v2062_v51  ;;  %v1099_v19 = vld [vmem:[#allocation2 + $0x50] sm:$0x1]  ;;  %v1066_v51 = vld [vmem:[#allocation8 + $0x128] sm:$0xff]  ;;  %v2088_v50 = vpack.c.bf16 %v1063_v29, %v1061_v59  ;;  %v1065_v49 = vld [vmem:[#allocation8 + $0x120] sm:$0xff]  ;;  %v2094_v13 = vpack.c.bf16 %v1072_v11, %v1070_v53 }
 0x21e   : > { %1282 = vmatprep.mubr.f32.mxu1 %v1128_v17  ;;  %v1100_v25 = vld [vmem:[#allocation2 + $0x58] sm:$0x1]  ;;  %v1129_v26 = vrot.slane %v1099_v19, 1  ;;  %v2090_v10 = vpack.c.bf16 %v1068_v9, %v1066_v51  ;;  %v2092_v12 = vpack.c.bf16 %v1067_v20, %v1065_v49  ;;  %v1081_v35 = vld [vmem:[#allocation8 + $0x1a0] sm:$0xff]  ;;  %v1086_v37 = vld [vmem:[#allocation8 + $0x1c8] sm:$0xff] }
 0x21f   : > { %1283 = vmatmul.mubr.f32.gmra.mrb[4].mxu1 %v1125_v24  ;;  %v1131_v30 = vrot.slane %v1100_v25, 1  ;;  %v1076_v17 = vld [vmem:[#allocation8 + $0x178] sm:$0xff]  ;;  %v1078_v24 = vld [vmem:[#allocation8 + $0x188] sm:$0xff]  ;;  %v1087_v42 = vld [vmem:[#allocation8 + $0x1d0] sm:$0xff] }
 0x220   : > { %2065 = vmatpush1.bf16.msra.mxu1 %v2064_v16  ;;  %v1130_v36 = vsel %vm436_vm2, %v1124_v15, %v1129_v26  ;;  %v1071_v15 = vld [vmem:[#allocation8 + $0x150] sm:$0xff]  ;;  %v1074_v16 = vld [vmem:[#allocation8 + $0x168] sm:$0xff]  ;;  %v1080_v25 = vld [vmem:[#allocation8 + $0x198] sm:$0xff]  ;;  %v2100_v26 = vpack.c.bf16 %v1075_v22, %v1073_v21 }
 0x221   : > { %v1132_v32 = vsel %vm436_vm2, %v1127_v14, %v1131_v30  ;;  %2067 = vmatprep.subr.bf16.mxu1 %v2066_v18  ;;  %v1069_v14 = vld [vmem:[#allocation8 + $0x140] sm:$0xff]  ;;  %v2098_v19 = vpack.c.bf16 %v1076_v17, %v1074_v16  ;;  %v2102_v28 = vpack.c.bf16 %v1080_v25, %v1078_v24  ;;  %v1079_v30 = vld [vmem:[#allocation8 + $0x190] sm:$0xff]  ;;  %v1088_v38 = vld [vmem:[#allocation8 + $0x1d8] sm:$0xff]  ;;  %v1404_v25 = vrot.slane %v2785_v27, 2 }
 0x222   : > { %1288 = vmatprep.mubr.f32.mxu1 %v1132_v32  ;;  %v2096_v18 = vpack.c.bf16 %v1071_v15, %v1069_v14  ;;  %v1084_v32 = vld [vmem:[#allocation8 + $0x1b8] sm:$0xff]  ;;  %v1090_v43 = vld [vmem:[#allocation8 + $0x1e8] sm:$0xff]  ;;  %v1091_v0 = vld [vmem:[#allocation8 + $0x1f0] sm:$0xff] }
 0x223   : > { %1289 = vmatmul.mubr.f32.gmra.mrb[6].mxu1 %v1130_v36  ;;  %v1083_v36 = vld [vmem:[#allocation8 + $0x1b0] sm:$0xff]  ;;  %v1092_v44 = vld [vmem:[#allocation8 + $0x1f8] sm:$0xff]  ;;  %v1430_v57 = vld [vmem:[#allocation8 + $0x408] sm:$0xff] }
 0x224   : > { %2069 = vmatpush1.bf16.msra.mxu1 %v2068_v31  ;;  %1359 = vmatprep.mubr.f32.mxu1 %v1022_v39  ;;  %v1082_v31 = vld [vmem:[#allocation8 + $0x1a8] sm:$0xff]  ;;  %v2108_v39 = vpack.c.bf16 %v1083_v36, %v1081_v35  ;;  %v1432_v58 = vld [vmem:[#allocation8 + $0x418] sm:$0xff]  ;;  %v1431_v2 = vld [vmem:[#allocation8 + $0x410] sm:$0xff] }
 0x225   : > { %2071 = vmatprep.subr.bf16.mxu1 %v2070_v33  ;;  %v2104_v33 = vpack.c.bf16 %v1079_v30, %v1077_v3  ;;  %v2106_v34 = vpack.c.bf16 %v1084_v32, %v1082_v31  ;;  %v1434_v60 = vld [vmem:[#allocation8 + $0x428] sm:$0xff]  ;;  %v1436_v4 = vld [vmem:[#allocation8 + $0x438] sm:$0xff]  ;;  %v1435_v59 = vld [vmem:[#allocation8 + $0x430] sm:$0xff] }
 0x226   : > { %v1021_v29 = vld [vmem:[#allocation2] sm:$0xff]  ;;  %v1438_v51 = vld [vmem:[#allocation8 + $0x448] sm:$0xff]  ;;  %v1440_v9 = vld [vmem:[#allocation8 + $0x458] sm:$0xff] }
 0x227   : > { %v1437_v49 = vld [vmem:[#allocation8 + $0x440] sm:$0xff]  ;;  %v1439_v20 = vld [vmem:[#allocation8 + $0x450] sm:$0xff]  ;;  %v1442_v53 = vld [vmem:[#allocation8 + $0x468] sm:$0xff] }
 0x228   : > { %2073 = vmatpush1.bf16.msra.mxu1 %v2072_v40  ;;  %v2110_v40 = vpack.c.bf16 %v1088_v38, %v1086_v37  ;;  %v1444_v11 = vld [vmem:[#allocation8 + $0x478] sm:$0xff]  ;;  %v1385_v14 = vld [vmem:[#allocation2 + $0x8] sm:$0xfc]  ;;  %v1441_v16 = vld [vmem:[#allocation8 + $0x460] sm:$0xff] }
 0x229   : > { %2075 = vmatprep.subr.bf16.mxu1 %v2074_v41  ;;  %v1085_v41 = vld [vmem:[#allocation8 + $0x1c0] sm:$0xff]  ;;  %v2130_v15 = vpack.c.bf16 %v1444_v11, %v1442_v53  ;;  %v1443_v17 = vld [vmem:[#allocation8 + $0x470] sm:$0xff]  ;;  %v1448_v21 = vld [vmem:[#allocation8 + $0x498] sm:$0xff]  ;;  %v1403_v22 = vrot.slane %v1385_v14, 2 }
 0x22a   : > { %v2112_v45 = vpack.c.bf16 %v1087_v42, %v1085_v41  ;;  %v2132_v24 = vpack.c.bf16 %v1443_v17, %v1441_v16  ;;  %v1447_v3 = vld [vmem:[#allocation8 + $0x490] sm:$0xff]  ;;  %v1450_v30 = vld [vmem:[#allocation8 + $0x4a8] sm:$0xff]  ;;  %v1452_v31 = vld [vmem:[#allocation8 + $0x4b8] sm:$0xff] }
 0x22b   : > { %v1405_v32 = vsel %vm724_vm3, %v1403_v22, %v1404_v25  ;;  %v1449_v35 = vld [vmem:[#allocation8 + $0x4a0] sm:$0xff]  ;;  %v1451_v36 = vld [vmem:[#allocation8 + $0x4b0] sm:$0xff]  ;;  %v1454_v37 = vld [vmem:[#allocation8 + $0x4c8] sm:$0xff] }
 0x22c   : > { %2077 = vmatpush1.bf16.msra.mxu1 %v2076_v48  ;;  %v2114_v48 = vpack.c.bf16 %v1092_v44, %v1090_v43  ;;  %v1456_v38 = vld [vmem:[#allocation8 + $0x4d8] sm:$0xff]  ;;  %v1453_v41 = vld [vmem:[#allocation8 + $0x4c0] sm:$0xff]  ;;  %v1455_v42 = vld [vmem:[#allocation8 + $0x4d0] sm:$0xff] }
 0x22d   : > { %2079 = vmatprep.subr.bf16.mxu1 %v2078_v56  ;;  %v1089_v56 = vld [vmem:[#allocation8 + $0x1e0] sm:$0xff]  ;;  %v1458_v43 = vld [vmem:[#allocation8 + $0x4e8] sm:$0xff]  ;;  %v1460_v44 = vld [vmem:[#allocation8 + $0x4f8] sm:$0xff] }
 0x22e   : > { %v2116_v61 = vpack.c.bf16 %v1091_v0, %v1089_v56  ;;  %v1457_v56 = vld [vmem:[#allocation8 + $0x4e0] sm:$0xff]  ;;  %v1459_v0 = vld [vmem:[#allocation8 + $0x4f0] sm:$0xff]  ;;  %v1476_v53 = vld [vmem:[#allocation8 + $0x578] sm:$0xff] }
 0x22f   : > { %v1475_v14 = vld [vmem:[#allocation8 + $0x570] sm:$0xff]  ;;  %v1480_v16 = vld [vmem:[#allocation8 + $0x598] sm:$0xff]  ;;  %v1482_v22 = vld [vmem:[#allocation8 + $0x5a8] sm:$0xff] }
 0x230   : > { %2081 = vmatpush1.bf16.msra.mxu1 %v2080_v62  ;;  %v2118_v62 = vpack.c.bf16 %v1432_v58, %v1430_v57  ;;  %v1462_v57 = vld [vmem:[#allocation8 + $0x508] sm:$0xff]  ;;  %v1464_v58 = vld [vmem:[#allocation8 + $0x518] sm:$0xff] }
 0x231   : > { %2083 = vmatprep.subr.bf16.mxu1 %v2082_v63  ;;  %v1429_v63 = vld [vmem:[#allocation8 + $0x400] sm:$0xff] }
 0x232   : > { %v2120_v5 = vpack.c.bf16 %v1431_v2, %v1429_v63  ;;  %v1461_v63 = vld [vmem:[#allocation8 + $0x500] sm:$0xff]  ;;  %v1463_v2 = vld [vmem:[#allocation8 + $0x510] sm:$0xff] }
 0x234   : > { %2085 = vmatpush1.bf16.msra.mxu1 %v2084_v6  ;;  %v2122_v6 = vpack.c.bf16 %v1436_v4, %v1434_v60  ;;  %v1466_v60 = vld [vmem:[#allocation8 + $0x528] sm:$0xff]  ;;  %v1468_v4 = vld [vmem:[#allocation8 + $0x538] sm:$0xff] }
 0x235   : > { %2087 = vmatprep.subr.bf16.mxu1 %v2086_v8  ;;  %v1433_v8 = vld [vmem:[#allocation8 + $0x420] sm:$0xff] }
 0x238   : > { %2089 = vmatpush1.bf16.msra.mxu1 %v2088_v50  ;;  %v2124_v50 = vpack.c.bf16 %v1435_v59, %v1433_v8  ;;  %v1465_v8 = vld [vmem:[#allocation8 + $0x520] sm:$0xff]  ;;  %v1467_v59 = vld [vmem:[#allocation8 + $0x530] sm:$0xff] }
 0x239   : > { %2091 = vmatprep.subr.bf16.mxu1 %v2090_v10  ;;  %v2126_v10 = vpack.c.bf16 %v1440_v9, %v1438_v51  ;;  %v1472_v51 = vld [vmem:[#allocation8 + $0x558] sm:$0xff]  ;;  %v2156_v9 = vpack.c.bf16 %v1467_v59, %v1465_v8 }
 0x23c   : > { %2093 = vmatpush1.bf16.msra.mxu1 %v2092_v12  ;;  %v1026_v12 = vld [vmem:[#allocation2 + $0x38] sm:$0xff] }
 0x23d   : > { %2095 = vmatprep.subr.bf16.mxu1 %v2094_v13  ;;  %v2128_v13 = vpack.c.bf16 %v1439_v20, %v1437_v49  ;;  %v1471_v49 = vld [vmem:[#allocation8 + $0x550] sm:$0xff]  ;;  %v1474_v20 = vld [vmem:[#allocation8 + $0x568] sm:$0xff] }
 0x240   : > { %2097 = vmatpush1.bf16.msra.mxu1 %v2096_v18  ;;  %v1025_v18 = vld [vmem:[#allocation2 + $0x30] sm:$0xff] }
 0x241   : > { %2099 = vmatprep.subr.bf16.mxu1 %v2098_v19  ;;  %v1446_v19 = vld [vmem:[#allocation8 + $0x488] sm:$0xff] }
 0x244   : > { %2101 = vmatpush1.bf16.msra.mxu1 %v2100_v26  ;;  %v2134_v26 = vpack.c.bf16 %v1448_v21, %v1446_v19  ;;  %v1477_v19 = vld [vmem:[#allocation8 + $0x580] sm:$0xff]  ;;  %v1479_v21 = vld [vmem:[#allocation8 + $0x590] sm:$0xff] }
 0x245   : > { %2103 = vmatprep.subr.bf16.mxu1 %v2102_v28  ;;  %v1445_v28 = vld [vmem:[#allocation8 + $0x480] sm:$0xff] }
 0x248   : > { %2105 = vmatpush1.bf16.msra.mxu1 %v2104_v33  ;;  %v2136_v33 = vpack.c.bf16 %v1447_v3, %v1445_v28  ;;  %v1481_v3 = vld [vmem:[#allocation8 + $0x5a0] sm:$0xff] }
 0x249   : > { %2107 = vmatprep.subr.bf16.mxu1 %v2106_v34  ;;  %v2138_v34 = vpack.c.bf16 %v1452_v31, %v1450_v30  ;;  %v1483_v30 = vld [vmem:[#allocation8 + $0x5b0] sm:$0xff]  ;;  %v1486_v31 = vld [vmem:[#allocation8 + $0x5c8] sm:$0xff] }
 0x24c   : > { %2109 = vmatpush1.bf16.msra.mxu1 %v2108_v39  ;;  %v2140_v39 = vpack.c.bf16 %v1451_v36, %v1449_v35  ;;  %v1485_v35 = vld [vmem:[#allocation8 + $0x5c0] sm:$0xff]  ;;  %v1487_v36 = vld [vmem:[#allocation8 + $0x5d0] sm:$0xff] }
 0x24d   : > { %2111 = vmatprep.subr.bf16.mxu1 %v2110_v40  ;;  %v2142_v40 = vpack.c.bf16 %v1456_v38, %v1454_v37  ;;  %v1490_v37 = vld [vmem:[#allocation8 + $0x5e8] sm:$0xff]  ;;  %v1492_v38 = vld [vmem:[#allocation8 + $0x5f8] sm:$0xff] }
 0x250   : > { %2113 = vmatpush1.bf16.msra.mxu1 %v2112_v45  ;;  %v2144_v45 = vpack.c.bf16 %v1455_v42, %v1453_v41  ;;  %v1489_v41 = vld [vmem:[#allocation8 + $0x5e0] sm:$0xff]  ;;  %v1491_v42 = vld [vmem:[#allocation8 + $0x5f0] sm:$0xff] }
 0x251   : > { %2115 = vmatprep.subr.bf16.mxu1 %v2114_v48  ;;  %v2146_v48 = vpack.c.bf16 %v1460_v44, %v1458_v43  ;;  %v1384_v43 = vld [vmem:[#allocation2] sm:$0xfc]  ;;  %v2180_v44 = vpack.c.bf16 %v1491_v42, %v1489_v41 }
 0x254   : > { %2117 = vmatpush1.bf16.msra.mxu1 %v2116_v61  ;;  %v2148_v61 = vpack.c.bf16 %v1459_v0, %v1457_v56  ;;  %v1386_v0 = vld [vmem:[#allocation2 + $0x20] sm:$0x3] }
 0x255   : > { %2119 = vmatprep.subr.bf16.mxu1 %v2118_v62  ;;  %v2150_v62 = vpack.c.bf16 %v1464_v58, %v1462_v57  ;;  %v1401_v57 = vrot.slane %v2782_v23, 2  ;;  %v1389_v58 = vld [vmem:[#allocation2 + $0x38] sm:$0xfc] }
 0x257   : > { %1360 = vmatmul.mubr.f32.vlgmr.msra.gmra.mrb[0].mxu1 %v1021_v29  ;;  %v1470_v29 = vld [vmem:[#allocation8 + $0x548] sm:$0xff] }
 0x258   : > { %1365 = vmatprep.mubr.f32.mxu1 %v2785_v27  ;;  %2121 = vmatpush1.bf16.msra.mxu1 %v2120_v5  ;;  %v2152_v5 = vpack.c.bf16 %v1463_v2, %v1461_v63  ;;  %v1413_v2 = vrot.slane %v1389_v58, 2 }
 0x259   : > { %2123 = vmatprep.subr.bf16.mxu1 %v2122_v6  ;;  %v2154_v6 = vpack.c.bf16 %v1468_v4, %v1466_v60  ;;  %v1388_v60 = vld [vmem:[#allocation2 + $0x30] sm:$0xfc]  ;;  %v1391_v4 = vld [vmem:[#allocation2 + $0x58] sm:$0x3] }
 0x25a   : > { %v1410_v8 = vrot.slane %v1388_v60, 2  ;;  %v1418_v59 = vrot.slane %v1391_v4, 2  ;;  %v2292_v60 = vld [vmem:[%s2670_s12 + $0x30] sm:$0xff] }
 0x25b   : > { %1366 = vmatmul.mubr.f32.gmra.mrb[2].mxu1 %v2782_v23 }
 0x25c   : > { %1371 = vmatprep.mubr.f32.mxu1 %v1026_v12  ;;  %2125 = vmatpush1.bf16.msra.mxu1 %v2124_v50  ;;  %v2158_v50 = vpack.c.bf16 %v1472_v51, %v1470_v29  ;;  %v2162_v12 = vpack.c.bf16 %v1476_v53, %v1474_v20  ;;  %v1390_v29 = vld [vmem:[#allocation2 + $0x50] sm:$0x3]  ;;  %v1411_v51 = vrot.slane %v2791_v1, 2 }
 0x25d   : > { %2127 = vmatprep.subr.bf16.mxu1 %v2126_v10  ;;  %v1469_v10 = vld [vmem:[#allocation8 + $0x540] sm:$0xff] }
 0x25e   : > { %v2160_v11 = vpack.c.bf16 %v1471_v49, %v1469_v10  ;;  %v1412_v27 = vsel %vm724_vm3, %v1410_v8, %v1411_v51 }
 0x25f   : > { %1372 = vmatmul.mubr.f32.gmra.mrb[4].mxu1 %v1025_v18 }
 0x260   : > { %1377 = vmatprep.mubr.f32.mxu1 %v2795_v7  ;;  %2129 = vmatpush1.bf16.msra.mxu1 %v2128_v13  ;;  %v1473_v13 = vld [vmem:[#allocation8 + $0x560] sm:$0xff] }
 0x261   : > { %2131 = vmatprep.subr.bf16.mxu1 %v2130_v15  ;;  %v1478_v15 = vld [vmem:[#allocation8 + $0x588] sm:$0xff]  ;;  %v2164_v17 = vpack.c.bf16 %v1475_v14, %v1473_v13 }
 0x262   : > { %v2166_v18 = vpack.c.bf16 %v1480_v16, %v1478_v15 }
 0x263   : > { %1378 = vmatmul.mubr.f32.gmra.mrb[6].mxu1 %v2791_v1 }
 0x264   : > { %2133 = vmatpush1.bf16.msra.mxu1 %v2132_v24  ;;  %1557 = vmatprep.mubr.f32.mxu1 %v1405_v32  ;;  %v1484_v24 = vld [vmem:[#allocation8 + $0x5b8] sm:$0xff] }
 0x265   : > { %2135 = vmatprep.subr.bf16.mxu1 %v2134_v26  ;;  %v2168_v26 = vpack.c.bf16 %v1479_v21, %v1477_v19  ;;  %v2170_v28 = vpack.c.bf16 %v1484_v24, %v1482_v22  ;;  %v1488_v32 = vld [vmem:[#allocation8 + $0x5d8] sm:$0xff]  ;;  %v2287_v24 = vld [vmem:[%s2670_s12 + $0x8] sm:$0xff] }
 0x268   : > { %2137 = vmatpush1.bf16.msra.mxu1 %v2136_v33  ;;  %v2172_v33 = vpack.c.bf16 %v1483_v30, %v1481_v3 }
 0x269   : > { %2139 = vmatprep.subr.bf16.mxu1 %v2138_v34  ;;  %v2174_v34 = vpack.c.bf16 %v1488_v32, %v1486_v31  ;;  %v2288_v32 = vld [vmem:[%s2670_s12 + $0x10] sm:$0xff] }
 0x26c   : > { %2141 = vmatpush1.bf16.msra.mxu1 %v2140_v39  ;;  %v2176_v39 = vpack.c.bf16 %v1487_v36, %v1485_v35  ;;  %v2289_v36 = vld [vmem:[%s2670_s12 + $0x18] sm:$0xff] }
 0x26d   : > { %2143 = vmatprep.subr.bf16.mxu1 %v2142_v40  ;;  %v2178_v40 = vpack.c.bf16 %v1492_v38, %v1490_v37 }
 0x270   : > { %2145 = vmatpush1.bf16.msra.mxu1 %v2144_v45  ;;  %v1387_v45 = vld [vmem:[#allocation2 + $0x28] sm:$0x3] }
 0x271   : > { %2147 = vmatprep.subr.bf16.mxu1 %v2146_v48  ;;  %v1400_v48 = vrot.slane %v1384_v43, 2  ;;  %v1408_v56 = vrot.slane %v1387_v45, 2 }
 0x273   : > { %v1409_v63 = vsel %vm724_vm3, %v1404_v25, %v1408_v56  ;;  %v1416_v25 = vrot.slane %v1390_v29, 2 }
 0x274   : > { %2149 = vmatpush1.bf16.msra.mxu1 %v2148_v61  ;;  %v1402_v61 = vsel %vm724_vm3, %v1400_v48, %v1401_v57 }
 0x275   : > { %2151 = vmatprep.subr.bf16.mxu1 %v2150_v62  ;;  %v1406_v62 = vrot.slane %v1386_v0, 2  ;;  %v2291_v0 = vld [vmem:[%s2670_s12 + $0x28] sm:$0xff] }
 0x278   : > { %2153 = vmatpush1.bf16.msra.mxu1 %v2152_v5  ;;  %v1414_v5 = vrot.slane %v2795_v7, 2  ;;  %v1417_v7 = vsel %vm724_vm3, %v1411_v51, %v1416_v25 }
 0x279   : > { %2155 = vmatprep.subr.bf16.mxu1 %v2154_v6  ;;  %v1407_v6 = vsel %vm724_vm3, %v1401_v57, %v1406_v62 }
 0x27a   : > { %v1415_v23 = vsel %vm724_vm3, %v1413_v2, %v1414_v5 }
 0x27c   : > { %2157 = vmatpush1.bf16.msra.mxu1 %v2156_v9  ;;  %v1419_v9 = vsel %vm724_vm3, %v1414_v5, %v1418_v59  ;;  %v2293_v5 = vld [vmem:[%s2670_s12 + $0x38] sm:$0xff] }
 0x27d   : > { %2159 = vmatprep.subr.bf16.mxu1 %v2158_v50  ;;  %v1020_v50 = vld [vmem:[%s2912_s4] sm:$0xf] }
 0x27e   : > { %v1594_v10 = vrot.slane %v1020_v50, %v2761_v47  ;;  %v1598_v1 = vrot.slane %v1020_v50, %v922_v52  ;;  %v1620_v49 = vrot.slane %v1020_v50, %v2768_v54  ;;  %v1624_v20 = vrot.slane %v1020_v50, %v948_v55 }
 0x280   : > { %2161 = vmatpush1.bf16.msra.mxu1 %v2160_v11  ;;  %v1604_v53 = vrot.slane %v1594_v10, %v2761_v47  ;;  %v1608_v11 = vrot.slane %v1598_v1, %v2761_v47  ;;  %v1634_v14 = vrot.slane %v1624_v20, %v2768_v54 }
 0x281   : > { %2163 = vmatprep.subr.bf16.mxu1 %v2162_v12  ;;  %v1630_v12 = vrot.slane %v1620_v49, %v2768_v54 }
 0x284   : > { %2165 = vmatpush1.bf16.msra.mxu1 %v2164_v17 }
 0x285   : > { %2167 = vmatprep.subr.bf16.mxu1 %v2166_v18 }
 0x288   : > { %2169 = vmatpush1.bf16.msra.mxu1 %v2168_v26 }
 0x289   : > { %2171 = vmatprep.subr.bf16.mxu1 %v2170_v28 }
 0x28c   : > { %2173 = vmatpush1.bf16.msra.mxu1 %v2172_v33 }
 0x28d   : > { %2175 = vmatprep.subr.bf16.mxu1 %v2174_v34 }
 0x290   : > { %2177 = vmatpush1.bf16.msra.mxu1 %v2176_v39 }
 0x291   : > { %2179 = vmatprep.subr.bf16.mxu1 %v2178_v40 }
 0x294   : > { %2181 = vmatpush1.bf16.msra.mxu1 %v2180_v44  ;;  %v2290_v44 = vld [vmem:[%s2670_s12 + $0x20] sm:$0xff] }
 0x297   : > { %1558 = vmatmul.mubr.f32.vlgmr.msra.gmra.mrb[0].mxu1 %v1402_v61 }
 0x298   : > { %1563 = vmatprep.mubr.f32.mxu1 %v1409_v63 }
 0x29b   : > { %1564 = vmatmul.mubr.f32.gmra.mrb[2].mxu1 %v1407_v6 }
 0x29c   : > { %1569 = vmatprep.mubr.f32.mxu1 %v1415_v23 }
 0x29f   : > { %1570 = vmatmul.mubr.f32.gmra.mrb[4].mxu1 %v1412_v27 }
 0x2a0   : > { %1575 = vmatprep.mubr.f32.mxu1 %v1419_v9 }
 0x2a3   : > { %1576 = vmatmul.mubr.f32.gmra.mrb[6].mxu1 %v1417_v7 }
 0x36a   : > { %v1559_v13 = vpop.f32.mrb[0].mxu1 }
 0x36b   : > { %v1609_v15 = vmul.f32 %v1604_v53, %v1559_v13  ;;  %v1561_v16 = vpop.f32.mrb[1].mxu1 }
 0x36c   : > { %v1610_v17 = vmul.f32 %v1608_v11, %v1561_v16 }
 0x36d   : > { %v1635_v52 = vadd.f32 %v1630_v12, %v1609_v15 }
 0x36e   : > { %v1636_v18 = vadd.f32 %v1634_v14, %v1610_v17  ;;  %v1565_v19 = vpop.f32.mrb[2].mxu1 }
 0x36f   : > { %v1643_v55 = vadd.f32 %v2286_v46, %v1635_v52  ;;  %v1611_v21 = vmul.f32 %v1604_v53, %v1565_v19  ;;  %v1567_v22 = vpop.f32.mrb[3].mxu1 }
 0x370   : > { %v1644_v47 = vadd.f32 %v2287_v24, %v1636_v18  ;;  %v1612_v26 = vmul.f32 %v1608_v11, %v1567_v22 }
 0x371   : > { %v1651_v28 = vmax.f32 %v1643_v55, 0.0  ;;  %v1637_v3 = vadd.f32 %v1630_v12, %v1611_v21 }
 0x372   : > { %v1652_v30 = vmax.f32 %v1644_v47, 0.0  ;;  %v1638_v54 = vadd.f32 %v1634_v14, %v1612_v26  ;;  %v1571_v31 = vpop.f32.mrb[4].mxu1 }
 0x373   : > { %1659 = vst [vmem:[%s2842_s10] sm:$0xff] %v1651_v28  ;;  %v1645_v33 = vadd.f32 %v2288_v32, %v1637_v3  ;;  %v1613_v34 = vmul.f32 %v1604_v53, %v1571_v31  ;;  %v1573_v35 = vpop.f32.mrb[5].mxu1 }
 0x374   : > { %1660 = vst [vmem:[%s2842_s10 + $0x8] sm:$0xff] %v1652_v30  ;;  %v1646_v37 = vadd.f32 %v2289_v36, %v1638_v54  ;;  %v1614_v38 = vmul.f32 %v1608_v11, %v1573_v35 }
 0x375   : > { %v1653_v39 = vmax.f32 %v1645_v33, 0.0  ;;  %v1639_v40 = vadd.f32 %v1630_v12, %v1613_v34 }
 0x376   : > { %v1654_v41 = vmax.f32 %v1646_v37, 0.0  ;;  %v1640_v42 = vadd.f32 %v1634_v14, %v1614_v38  ;;  %v1577_v43 = vpop.f32.mrb[6].mxu1 }
 0x377   : > { %1661 = vst [vmem:[%s2842_s10 + $0x10] sm:$0xff] %v1653_v39  ;;  %v1647_v45 = vadd.f32 %v2290_v44, %v1639_v40  ;;  %v1615_v48 = vmul.f32 %v1604_v53, %v1577_v43  ;;  %v1579_v56 = vpop.f32.mrb[7].mxu1 }
 0x378   : > { %1662 = vst [vmem:[%s2842_s10 + $0x18] sm:$0xff] %v1654_v41  ;;  %v1648_v57 = vadd.f32 %v2291_v0, %v1640_v42  ;;  %v1616_v58 = vmul.f32 %v1608_v11, %v1579_v56 }
 0x379   : > { %v1655_v61 = vmax.f32 %v1647_v45, 0.0  ;;  %v1641_v62 = vadd.f32 %v1630_v12, %v1615_v48 }
 0x37a   : > { %v1656_v63 = vmax.f32 %v1648_v57, 0.0  ;;  %v1642_v2 = vadd.f32 %v1634_v14, %v1616_v58 }
 0x37b   : > { %1663 = vst [vmem:[%s2842_s10 + $0x20] sm:$0xff] %v1655_v61  ;;  %v1649_v4 = vadd.f32 %v2292_v60, %v1641_v62 }
 0x37c   : > { %1664 = vst [vmem:[%s2842_s10 + $0x28] sm:$0xff] %v1656_v63  ;;  %v1650_v6 = vadd.f32 %v2293_v5, %v1642_v2 }
 0x37d   : > { %v1657_v8 = vmax.f32 %v1649_v4, 0.0 }
 0x37e   : > { %v1658_v23 = vmax.f32 %v1650_v6, 0.0 }
 0x37f   : > { %1665 = vst [vmem:[%s2842_s10 + $0x30] sm:$0xff] %v1657_v8 }
 0x380   : > { %1666 = vst [vmem:[%s2842_s10 + $0x38] sm:$0xff] %v1658_v23 }
 0x381   : > { %2393 = shalt.err (!%p2390_p7)
}
 0x382   : > { %s2394_s12 = scalar_lea.hbm %s2861_s11, 1024  ;;  %s2398_s15 = scalar_lea.hbm %s2913_s5, 4096 }
 0x383   : > { %p2395_p9 = scmp.ne.s32.totalorder %s2861_s11, %s2394_s12  ;;  %p2399_p5 = scmp.lt.u32.totalorder %s2861_s11, %s2913_s5 }
 0x384   : > { %p2400_p10 = scmp.lt.u32.totalorder %s2398_s15, %s2394_s12  ;;  %p2402_p2 = scmp.lt.u32.totalorder %s2394_s12, %s2861_s11 }
 0x385   : > { %p2396_p12 = pnand %p2395_p9, %p2609_p6 }
 0x386   : > { %p2401_p1 = por %p2400_p10, %p2399_p5 }
 0x387   : > { %p2397_p0 = pneg %p2396_p12 }
 0x388   : > { %p2403_p4 = por %p2402_p2, %p2401_p1 }
 0x38a   : > { %p2404_p8 = pnand %p2403_p4, %p2397_p0 }
 0x38c   : > { %2407 = shalt.err (!%p2404_p8)
}
 0x38d   : > { %s2459_s28 = smov 256   ;;  %s2460_s9 = smov 16  }
 0x38e   : > { %2224 = dma.vmem_to_hbm [thread:$0]  (%p2609_p6), %s2863_s13, 1024, %s2861_s11, %s1668_s22, %s2459_s28, %s2459_s28, %s2460_s9  }
 0x38f PF: > { %p2246_p11 = scmp.ge.s32.totalorder %s2450_s21, 2  ;;  %s1697_s30 = sand.u32 1, %s2438_s18  }
 0x390   : > { %p2928_p13 = scmp.ne.s32.totalorder %s2918_s25, 0  ;;  %s1698_s17 = scalar_lea.sflag [#allocation5], %s1697_s30 }
 0x392   : > { %p2238_p3 = pnand %p2246_p11, %p2928_p13 }
 0x394   : > { %2433 = dma.done.wait (!%p2238_p3), %s1698_s17, 1024  }
 0x395   : > { %2435 = vsyncadd (!%p2238_p3), %s1698_s17, 4294966272  ;;  %p19_p7 = scmp.ge.s32.totalorder %s2599_s29, 6   ;;  %s2929_s18 = smov %s2442_s19 }
 0x396   : > { %s2930_s19 = smov %s2446_s20  ;;  %s2931_s20 = smov %s2615_s27 }
 0x397   : > { %s2932_s21 = smov %s2599_s29  ;;  %21 = sbr.rel (!%p19_p7) target bundleno = 6 (0x6), region = 100 }
 0x39e   :  { %1703 = vsyncpa [#allocation4], 1 }
 0x39f   :  { %1705 = vsyncpa [#allocation4 + $0x1], 1 }
 0x3a0   :  { %1706 = vsyncpa [#allocation7], 1 }
 0x3a1   :  { %1707 = vsyncpa [#allocation5], 1 }
 0x3a2   :  { %1709 = vsyncpa [#allocation5 + $0x1], 1 }

</bundles_post_ra>
